<compile_context>
chip_gen: v7x
topology: tpu7x:2x2x1
jax: 0.10.0
libtpu: 0.0.40
codegen_flags: <defaults>
</compile_context>

<pallas_src>
import jax
import jax.numpy as jnp
from jax import lax
from jax.experimental import pallas as pl
from jax.experimental.pallas import tpu as pltpu

# ----------------------- small synthetic model config -----------------------
B = 2           # batch
S = 8           # context length (torch: 77 -> pad to a multiple of 8 at scale)
D = 128         # transformer width, lane-padded (torch RN50: 512)
H = 4           # attention heads
DH = D // H     # head dim
L = 2           # transformer layers (torch RN50: 12)
V = 64          # vocab size (torch: 49408)
P = 128         # text projection dim, lane-padded (torch RN50: 1024)
EPS = 1e-5

BT = B          # batch rows per tile (whole batch in one tile at this scale)
NB = B // BT    # batch tiles (grid axis 0)


def _layernorm(x, g, b):
    mu = jnp.mean(x, axis=-1, keepdims=True)
    xc = x - mu
    var = jnp.mean(xc * xc, axis=-1, keepdims=True)
    return xc * lax.rsqrt(var + EPS) * g + b


# ------------------------- fused transformer kernel -------------------------
def clip_text_kernel(x_ref, onehot_ref, causal_ref,
                     ln1g_ref, ln1b_ref, wqkv_ref, bqkv_ref, wo_ref, bo_ref,
                     ln2g_ref, ln2b_ref, w1_ref, b1_ref, w2_ref, b2_ref,
                     lnfg_ref, lnfb_ref, proj_ref,
                     o_ref,
                     resid_ref):
    layer = pl.program_id(1)

    # Seed the residual stream with (token_emb + pos_emb) for this batch tile.
    @pl.when(layer == 0)
    def _():
        resid_ref[...] = x_ref[...].reshape(BT * S, D)

    x = resid_ref[...]                                           # (BT*S, D) f32

    # ---- attention block: x = x + attn(ln_1(x)) ----
    h = _layernorm(x, ln1g_ref[0], ln1b_ref[0])
    qkv = jnp.dot(h.astype(jnp.bfloat16), wqkv_ref[0],
                  preferred_element_type=jnp.float32) + bqkv_ref[0]   # (BT*S, 3D)

    scale = 1.0 / (DH ** 0.5)
    attn_rows = []
    for i in range(BT):                                          # static unroll over tile rows
        qkv_i = qkv[i * S:(i + 1) * S, :]                        # (S, 3D) static sublane slice
        q = jnp.swapaxes((qkv_i[:, 0 * D:1 * D] * scale).reshape(S, H, DH), 0, 1)  # (H,S,DH)
        k = jnp.swapaxes(qkv_i[:, 1 * D:2 * D].reshape(S, H, DH), 0, 1)
        v = jnp.swapaxes(qkv_i[:, 2 * D:3 * D].reshape(S, H, DH), 0, 1)

        s = jnp.einsum('hqd,hkd->hqk',
                       q.astype(jnp.bfloat16), k.astype(jnp.bfloat16),
                       preferred_element_type=jnp.float32)        # (H, S, S) f32
        s = s + causal_ref[...]                                   # causal mask (f32)
        s = s - jnp.max(s, axis=-1, keepdims=True)
        p = jnp.exp(s)
        p = p * pl.reciprocal(jnp.sum(p, axis=-1, keepdims=True), approx=True)
        ctx = jnp.einsum('hqk,hkd->hqd',
                         p.astype(jnp.bfloat16), v.astype(jnp.bfloat16),
                         preferred_element_type=jnp.float32)      # (H, S, DH)
        attn_rows.append(jnp.swapaxes(ctx, 0, 1).reshape(S, D))
    attn = jnp.concatenate(attn_rows, axis=0)                     # (BT*S, D)
    attn = jnp.dot(attn.astype(jnp.bfloat16), wo_ref[0],
                   preferred_element_type=jnp.float32) + bo_ref[0]
    x = x + attn

    # ---- MLP block: x = x + c_proj(QuickGELU(c_fc(ln_2(x)))) ----
    h2 = _layernorm(x, ln2g_ref[0], ln2b_ref[0])
    m = jnp.dot(h2.astype(jnp.bfloat16), w1_ref[0],
                preferred_element_type=jnp.float32) + b1_ref[0]
    m = m * jax.nn.sigmoid(1.702 * m)                             # QuickGELU (f32)
    m = jnp.dot(m.astype(jnp.bfloat16), w2_ref[0],
                preferred_element_type=jnp.float32) + b2_ref[0]
    x = x + m
    resid_ref[...] = x

    # ---- fused head: select EOT row -> ln_final -> @ text_projection ----
    @pl.when(layer == L - 1)
    def _():
        xb = x.reshape(BT, S, D)
        w = onehot_ref[...]                                       # (BT, S) one-hot, f32
        pooled = jnp.sum(xb * w[:, :, None], axis=1)              # (BT, D), exact select
        pooled = _layernorm(pooled, lnfg_ref[...], lnfb_ref[...])
        o_ref[...] = jnp.dot(pooled.astype(jnp.bfloat16), proj_ref[...],
                             preferred_element_type=jnp.float32)  # (BT, P)


def clip_text_encode(tokens, params):
    # glue: embedding gather + positional add (pure layout/gather, done in XLA)
    x = params["token_emb"][tokens].astype(jnp.float32)           # (B, S, D)
    x = x + params["pos_emb"][None, :, :]

    # EOT-row selector as a one-hot mask (CLIP: argmax over token ids).
    eot = jnp.argmax(tokens, axis=-1)                             # (B,)
    onehot = (jnp.arange(S)[None, :] == eot[:, None]).astype(jnp.float32)  # (B, S)

    # causal attention mask, hoisted out of the per-layer body
    r = jnp.arange(S)[:, None]
    c = jnp.arange(S)[None, :]
    causal = jnp.where(c <= r, 0.0, -1e9).astype(jnp.float32)     # (S, S)

    per_layer_vec = lambda w: pl.BlockSpec((1, 1, w), lambda nb, l: (l, 0, 0))
    per_layer_mat = lambda m, n: pl.BlockSpec((1, m, n), lambda nb, l: (l, 0, 0))
    const2d = lambda m, n: pl.BlockSpec((m, n), lambda nb, l: (0, 0))

    in_specs = [
        pl.BlockSpec((BT, S, D), lambda nb, l: (nb, 0, 0)),    # x0 (tok+pos emb)
        pl.BlockSpec((BT, S), lambda nb, l: (nb, 0)),          # EOT one-hot
        const2d(S, S),                                         # causal mask
        per_layer_vec(D),                                      # ln1 gamma
        per_layer_vec(D),                                      # ln1 beta
        per_layer_mat(D, 3 * D),                               # W_qkv (bf16)
        per_layer_vec(3 * D),                                  # b_qkv
        per_layer_mat(D, D),                                   # W_out (bf16)
        per_layer_vec(D),                                      # b_out
        per_layer_vec(D),                                      # ln2 gamma
        per_layer_vec(D),                                      # ln2 beta
        per_layer_mat(D, 4 * D),                               # W_fc (bf16)
        per_layer_vec(4 * D),                                  # b_fc
        per_layer_mat(4 * D, D),                               # W_proj (bf16)
        per_layer_vec(D),                                      # b_proj
        const2d(1, D),                                         # lnf gamma
        const2d(1, D),                                         # lnf beta
        const2d(D, P),                                         # text_projection (bf16)
    ]

    out = pl.pallas_call(
        clip_text_kernel,
        out_shape=jax.ShapeDtypeStruct((B, P), jnp.float32),
        grid_spec=pltpu.PrefetchScalarGridSpec(
            num_scalar_prefetch=0,
            grid=(NB, L),
            in_specs=in_specs,
            out_specs=pl.BlockSpec((BT, P), lambda nb, l: (nb, 0)),
            scratch_shapes=[pltpu.VMEM((BT * S, D), jnp.float32)],  # residual carry
        ),
        compiler_params=pltpu.CompilerParams(
            dimension_semantics=("parallel", "arbitrary"),
            # explicit VMEM budget; safe on v5e/v6e (128 MiB) and v7x (64 MiB)
            vmem_limit_bytes=48 * 1024 * 1024,
        ),
    )(x, onehot, causal,
      params["ln1_g"], params["ln1_b"], params["w_qkv"], params["b_qkv"],
      params["w_o"], params["b_o"],
      params["ln2_g"], params["ln2_b"], params["w_fc"], params["b_fc"],
      params["w_pr"], params["b_pr"],
      params["lnf_g"], params["lnf_b"], params["text_projection"])
    return out


# --------------------------- parameter init ----------------------------------
def init_params(key):
    ks = jax.random.split(key, 8)
    f32, bf16 = jnp.float32, jnp.bfloat16

    def nrm(k, shape, dtype):
        return (0.02 * jax.random.normal(k, shape)).astype(dtype)

    return {
        "token_emb": nrm(ks[0], (V, D), f32),
        "pos_emb":   nrm(ks[1], (S, D), f32),
        "ln1_g": jnp.ones((L, 1, D), f32),
        "ln1_b": jnp.zeros((L, 1, D), f32),
        "w_qkv": nrm(ks[2], (L, D, 3 * D), bf16),
        "b_qkv": jnp.zeros((L, 1, 3 * D), f32),
        "w_o":   nrm(ks[3], (L, D, D), bf16),
        "b_o":   jnp.zeros((L, 1, D), f32),
        "ln2_g": jnp.ones((L, 1, D), f32),
        "ln2_b": jnp.zeros((L, 1, D), f32),
        "w_fc":  nrm(ks[4], (L, D, 4 * D), bf16),
        "b_fc":  jnp.zeros((L, 1, 4 * D), f32),
        "w_pr":  nrm(ks[5], (L, 4 * D, D), bf16),
        "b_pr":  jnp.zeros((L, 1, D), f32),
        "lnf_g": jnp.ones((1, D), f32),
        "lnf_b": jnp.zeros((1, D), f32),
        "text_projection": nrm(ks[6], (D, P), bf16),
    }


# ------------------------------ main ------------------------------------------
if __name__ == "__main__":
    key = jax.random.PRNGKey(0)
    params = init_params(key)

    # deterministic synthetic "tokenized" text: SOT=1, body tokens, EOT=V-1
    # (EOT is the max token id, so argmax(dim=-1) picks it, as in CLIP).
    k_tok = jax.random.fold_in(key, 123)
    lengths = jnp.array([5, 7], dtype=jnp.int32)               # per-sequence len
    body = jax.random.randint(k_tok, (B, S), 2, V - 1)         # ids in [2, V-2]
    pos_idx = jnp.arange(S)[None, :]
    tokens = jnp.where(pos_idx == 0, 1, body)
    tokens = jnp.where(pos_idx == lengths[:, None] - 1, V - 1, tokens)
    tokens = jnp.where(pos_idx >= lengths[:, None], 0, tokens).astype(jnp.int32)

    out = jax.jit(clip_text_encode)(tokens, params)
    out = jax.block_until_ready(out)

    assert out.shape == (B, P) and out.dtype == jnp.float32
    assert bool(jnp.all(jnp.isfinite(out)))
    print("KERNEL_OK")
</pallas_src>

<mosaic_0001>
module attributes {stable_mosaic.version = 11 : i64} {
  func.func @clip_text_kernel(%arg0: i32, %arg1: i32, %arg2: memref<2x8x128xf32, #tpu.memory_space<vmem>>, %arg3: memref<2x8xf32, #tpu.memory_space<vmem>>, %arg4: memref<8x8xf32, #tpu.memory_space<vmem>>, %arg5: memref<1x1x128xf32, #tpu.memory_space<vmem>>, %arg6: memref<1x1x128xf32, #tpu.memory_space<vmem>>, %arg7: memref<1x128x384xbf16, #tpu.memory_space<vmem>>, %arg8: memref<1x1x384xf32, #tpu.memory_space<vmem>>, %arg9: memref<1x128x128xbf16, #tpu.memory_space<vmem>>, %arg10: memref<1x1x128xf32, #tpu.memory_space<vmem>>, %arg11: memref<1x1x128xf32, #tpu.memory_space<vmem>>, %arg12: memref<1x1x128xf32, #tpu.memory_space<vmem>>, %arg13: memref<1x128x512xbf16, #tpu.memory_space<vmem>>, %arg14: memref<1x1x512xf32, #tpu.memory_space<vmem>>, %arg15: memref<1x512x128xbf16, #tpu.memory_space<vmem>>, %arg16: memref<1x1x128xf32, #tpu.memory_space<vmem>>, %arg17: memref<1x128xf32, #tpu.memory_space<vmem>>, %arg18: memref<1x128xf32, #tpu.memory_space<vmem>>, %arg19: memref<128x128xbf16, #tpu.memory_space<vmem>>, %arg20: memref<2x128xf32, #tpu.memory_space<vmem>>, %arg21: memref<16x128xf32, #tpu.memory_space<vmem>>) attributes {dimension_semantics = [#tpu.dimension_semantics<parallel>, #tpu.dimension_semantics<arbitrary>], iteration_bounds = array<i64: 1, 2>, scalar_prefetch = 0 : i64, scratch_operands = 1 : i64, tpu.core_type = #tpu.core_type<tc>, window_params = [{transform_indices = @transform_0, window_bounds = array<i64: 2, 8, 128>}, {transform_indices = @transform_1, window_bounds = array<i64: 2, 8>}, {pipeline_mode = #tpu.pipeline_mode<synchronous>, transform_indices = @transform_2, window_bounds = array<i64: 8, 8>}, {transform_indices = @transform_3, window_bounds = array<i64: 1, 1, 128>}, {transform_indices = @transform_4, window_bounds = array<i64: 1, 1, 128>}, {transform_indices = @transform_5, window_bounds = array<i64: 1, 128, 384>}, {transform_indices = @transform_6, window_bounds = array<i64: 1, 1, 384>}, {transform_indices = @transform_7, window_bounds = array<i64: 1, 128, 128>}, {transform_indices = @transform_8, window_bounds = array<i64: 1, 1, 128>}, {transform_indices = @transform_9, window_bounds = array<i64: 1, 1, 128>}, {transform_indices = @transform_10, window_bounds = array<i64: 1, 1, 128>}, {transform_indices = @transform_11, window_bounds = array<i64: 1, 128, 512>}, {transform_indices = @transform_12, window_bounds = array<i64: 1, 1, 512>}, {transform_indices = @transform_13, window_bounds = array<i64: 1, 512, 128>}, {transform_indices = @transform_14, window_bounds = array<i64: 1, 1, 128>}, {pipeline_mode = #tpu.pipeline_mode<synchronous>, transform_indices = @transform_15, window_bounds = array<i64: 1, 128>}, {pipeline_mode = #tpu.pipeline_mode<synchronous>, transform_indices = @transform_16, window_bounds = array<i64: 1, 128>}, {pipeline_mode = #tpu.pipeline_mode<synchronous>, transform_indices = @transform_17, window_bounds = array<i64: 128, 128>}, {transform_indices = @transform_18, window_bounds = array<i64: 2, 128>}]} {
    %c0_i32 = arith.constant 0 : i32
    %0 = arith.cmpi eq, %arg1, %c0_i32 : i32
    %1 = arith.extui %0 : i1 to i32
    %c0_i32_0 = arith.constant 0 : i32
    %2 = arith.cmpi ne, %1, %c0_i32_0 : i32
    scf.if %2 {
      %c0_70 = arith.constant 0 : index
      %c0_71 = arith.constant 0 : index
      %c0_72 = arith.constant 0 : index
      %167 = vector.load %arg2[%c0_70, %c0_71, %c0_72] : memref<2x8x128xf32, #tpu.memory_space<vmem>>, vector<2x8x128xf32>
      %168 = vector.shape_cast %167 : vector<2x8x128xf32> to vector<16x128xf32>
      %c0_73 = arith.constant 0 : index
      %c0_74 = arith.constant 0 : index
      %169 = vector.load %arg21[%c0_73, %c0_74] : memref<16x128xf32, #tpu.memory_space<vmem>>, vector<16x128xf32>
      tpu.vector_store %arg21[%c0_73, %c0_74], %168 {strides = array<i32>} : memref<16x128xf32, #tpu.memory_space<vmem>>, vector<16x128xf32>,
    } else {
    }
    %c0 = arith.constant 0 : index
    %c0_1 = arith.constant 0 : index
    %3 = vector.load %arg21[%c0, %c0_1] : memref<16x128xf32, #tpu.memory_space<vmem>>, vector<16x128xf32>
    %c0_2 = arith.constant 0 : index
    %c0_3 = arith.constant 0 : index
    %c0_4 = arith.constant 0 : index
    %4 = vector.load %arg5[%c0_2, %c0_3, %c0_4] : memref<1x1x128xf32, #tpu.memory_space<vmem>>, vector<1x1x128xf32>
    %5 = vector.shape_cast %4 : vector<1x1x128xf32> to vector<1x128xf32>
    %c0_5 = arith.constant 0 : index
    %c0_6 = arith.constant 0 : index
    %c0_7 = arith.constant 0 : index
    %6 = vector.load %arg6[%c0_5, %c0_6, %c0_7] : memref<1x1x128xf32, #tpu.memory_space<vmem>>, vector<1x1x128xf32>
    %7 = vector.shape_cast %6 : vector<1x1x128xf32> to vector<1x128xf32>
    %cst = arith.constant dense<0.000000e+00> : vector<16xf32>
    %8 = vector.multi_reduction <add>, %3, %cst [1] : vector<16x128xf32> to vector<16xf32>
    %9 = vector.shape_cast %8 : vector<16xf32> to vector<16x1xf32>
    %cst_8 = arith.constant 1.280000e+02 : f32
    %10 = vector.broadcast %cst_8 : f32 to vector<16x1xf32>
    %11 = arith.divf %9, %10 : vector<16x1xf32>
    %12 = vector.broadcast %11 : vector<16x1xf32> to vector<16x128xf32>
    %13 = arith.subf %3, %12 : vector<16x128xf32>
    %14 = arith.mulf %13, %13 : vector<16x128xf32>
    %cst_9 = arith.constant dense<0.000000e+00> : vector<16xf32>
    %15 = vector.multi_reduction <add>, %14, %cst_9 [1] : vector<16x128xf32> to vector<16xf32>
    %16 = vector.shape_cast %15 : vector<16xf32> to vector<16x1xf32>
    %cst_10 = arith.constant 1.280000e+02 : f32
    %17 = vector.broadcast %cst_10 : f32 to vector<16x1xf32>
    %18 = arith.divf %16, %17 : vector<16x1xf32>
    %cst_11 = arith.constant 9.99999974E-6 : f32
    %19 = vector.broadcast %cst_11 : f32 to vector<16x1xf32>
    %20 = arith.addf %18, %19 : vector<16x1xf32>
    %21 = math.rsqrt %20 : vector<16x1xf32>
    %22 = vector.broadcast %21 : vector<16x1xf32> to vector<16x128xf32>
    %23 = arith.mulf %13, %22 : vector<16x128xf32>
    %24 = vector.broadcast %5 : vector<1x128xf32> to vector<16x128xf32>
    %25 = arith.mulf %23, %24 : vector<16x128xf32>
    %26 = vector.broadcast %7 : vector<1x128xf32> to vector<16x128xf32>
    %27 = arith.addf %25, %26 : vector<16x128xf32>
    %28 = arith.truncf %27 : vector<16x128xf32> to vector<16x128xbf16>
    %c0_12 = arith.constant 0 : index
    %c0_13 = arith.constant 0 : index
    %c0_14 = arith.constant 0 : index
    %29 = vector.load %arg7[%c0_12, %c0_13, %c0_14] : memref<1x128x384xbf16, #tpu.memory_space<vmem>>, vector<1x128x384xbf16>
    %30 = vector.shape_cast %29 : vector<1x128x384xbf16> to vector<128x384xbf16>
    %cst_15 = arith.constant dense<0.000000e+00> : vector<16x384xf32>
    %31 = tpu.matmul %28, %30, %cst_15 {dimension_numbers = #tpu.dot_dimension_numbers<[1], [0], [0], [1], [0, 0, 1, 1], [], []>} : vector<16x128xbf16>, vector<128x384xbf16>, vector<16x384xf32> -> vector<16x384xf32>
    %c0_16 = arith.constant 0 : index
    %c0_17 = arith.constant 0 : index
    %c0_18 = arith.constant 0 : index
    %32 = vector.load %arg8[%c0_16, %c0_17, %c0_18] : memref<1x1x384xf32, #tpu.memory_space<vmem>>, vector<1x1x384xf32>
    %33 = vector.shape_cast %32 : vector<1x1x384xf32> to vector<1x384xf32>
    %34 = vector.broadcast %33 : vector<1x384xf32> to vector<16x384xf32>
    %35 = arith.addf %31, %34 : vector<16x384xf32>
    %36 = vector.extract_strided_slice %35 {offsets = [0, 0], sizes = [8, 384], strides = [1, 1]} : vector<16x384xf32> to vector<8x384xf32>
    %37 = vector.extract_strided_slice %36 {offsets = [0, 0], sizes = [8, 128], strides = [1, 1]} : vector<8x384xf32> to vector<8x128xf32>
    %cst_19 = arith.constant 0.176776692 : f32
    %38 = vector.broadcast %cst_19 : f32 to vector<8x128xf32>
    %39 = arith.mulf %37, %38 : vector<8x128xf32>
    %40 = vector.shape_cast %39 : vector<8x128xf32> to vector<8x4x32xf32>
    %41 = tpu.transpose %40, [1, 0, 2] : vector<8x4x32xf32> -> vector<4x8x32xf32>
    %42 = vector.extract_strided_slice %36 {offsets = [0, 128], sizes = [8, 128], strides = [1, 1]} : vector<8x384xf32> to vector<8x128xf32>
    %43 = vector.shape_cast %42 : vector<8x128xf32> to vector<8x4x32xf32>
    %44 = tpu.transpose %43, [1, 0, 2] : vector<8x4x32xf32> -> vector<4x8x32xf32>
    %45 = vector.extract_strided_slice %36 {offsets = [0, 256], sizes = [8, 128], strides = [1, 1]} : vector<8x384xf32> to vector<8x128xf32>
    %46 = vector.shape_cast %45 : vector<8x128xf32> to vector<8x4x32xf32>
    %47 = tpu.transpose %46, [1, 0, 2] : vector<8x4x32xf32> -> vector<4x8x32xf32>
    %48 = arith.truncf %41 : vector<4x8x32xf32> to vector<4x8x32xbf16>
    %49 = arith.truncf %44 : vector<4x8x32xf32> to vector<4x8x32xbf16>
    "tpu.trace_start"() <{level = 10 : i32, message = "hqd,hkd->hqk"}> : () -> ()
    %cst_20 = arith.constant dense<0.000000e+00> : vector<4x8x8xf32>
    %50 = tpu.matmul %48, %49, %cst_20 {dimension_numbers = #tpu.dot_dimension_numbers<[2], [2], [1], [1], [0, 0, 0, 1, 1, 1], [0], [0]>} : vector<4x8x32xbf16>, vector<4x8x32xbf16>, vector<4x8x8xf32> -> vector<4x8x8xf32>
    "tpu.trace_stop"() : () -> ()
    %c0_21 = arith.constant 0 : index
    %c0_22 = arith.constant 0 : index
    %51 = vector.load %arg4[%c0_21, %c0_22] : memref<8x8xf32, #tpu.memory_space<vmem>>, vector<8x8xf32>
    %52 = vector.shape_cast %51 : vector<8x8xf32> to vector<1x8x8xf32>
    %53 = vector.broadcast %52 : vector<1x8x8xf32> to vector<4x8x8xf32>
    %54 = arith.addf %50, %53 : vector<4x8x8xf32>
    %cst_23 = arith.constant dense<0xFF800000> : vector<4x8xf32>
    %55 = vector.multi_reduction <maximumf>, %54, %cst_23 [2] : vector<4x8x8xf32> to vector<4x8xf32>
    %56 = vector.shape_cast %55 : vector<4x8xf32> to vector<4x8x1xf32>
    %57 = vector.broadcast %56 : vector<4x8x1xf32> to vector<4x8x8xf32>
    %58 = arith.subf %54, %57 : vector<4x8x8xf32>
    %59 = math.exp %58 : vector<4x8x8xf32>
    %cst_24 = arith.constant dense<0.000000e+00> : vector<4x8xf32>
    %60 = vector.multi_reduction <add>, %59, %cst_24 [2] : vector<4x8x8xf32> to vector<4x8xf32>
    %61 = vector.shape_cast %60 : vector<4x8xf32> to vector<4x8x1xf32>
    %62 = tpu.reciprocal %61 {approx = true} : vector<4x8x1xf32> -> vector<4x8x1xf32>
    %63 = vector.broadcast %62 : vector<4x8x1xf32> to vector<4x8x8xf32>
    %64 = arith.mulf %59, %63 : vector<4x8x8xf32>
    %65 = arith.truncf %64 : vector<4x8x8xf32> to vector<4x8x8xbf16>
    %66 = arith.truncf %47 : vector<4x8x32xf32> to vector<4x8x32xbf16>
    "tpu.trace_start"() <{level = 10 : i32, message = "hqk,hkd->hqd"}> : () -> ()
    %cst_25 = arith.constant dense<0.000000e+00> : vector<4x8x32xf32>
    %67 = tpu.matmul %65, %66, %cst_25 {dimension_numbers = #tpu.dot_dimension_numbers<[2], [1], [1], [2], [0, 0, 0, 1, 1, 2], [0], [0]>} : vector<4x8x8xbf16>, vector<4x8x32xbf16>, vector<4x8x32xf32> -> vector<4x8x32xf32>
    "tpu.trace_stop"() : () -> ()
    %68 = tpu.transpose %67, [1, 0, 2] : vector<4x8x32xf32> -> vector<8x4x32xf32>
    %69 = vector.shape_cast %68 : vector<8x4x32xf32> to vector<8x128xf32>
    %70 = vector.extract_strided_slice %35 {offsets = [8, 0], sizes = [8, 384], strides = [1, 1]} : vector<16x384xf32> to vector<8x384xf32>
    %71 = vector.extract_strided_slice %70 {offsets = [0, 0], sizes = [8, 128], strides = [1, 1]} : vector<8x384xf32> to vector<8x128xf32>
    %cst_26 = arith.constant 0.176776692 : f32
    %72 = vector.broadcast %cst_26 : f32 to vector<8x128xf32>
    %73 = arith.mulf %71, %72 : vector<8x128xf32>
    %74 = vector.shape_cast %73 : vector<8x128xf32> to vector<8x4x32xf32>
    %75 = tpu.transpose %74, [1, 0, 2] : vector<8x4x32xf32> -> vector<4x8x32xf32>
    %76 = vector.extract_strided_slice %70 {offsets = [0, 128], sizes = [8, 128], strides = [1, 1]} : vector<8x384xf32> to vector<8x128xf32>
    %77 = vector.shape_cast %76 : vector<8x128xf32> to vector<8x4x32xf32>
    %78 = tpu.transpose %77, [1, 0, 2] : vector<8x4x32xf32> -> vector<4x8x32xf32>
    %79 = vector.extract_strided_slice %70 {offsets = [0, 256], sizes = [8, 128], strides = [1, 1]} : vector<8x384xf32> to vector<8x128xf32>
    %80 = vector.shape_cast %79 : vector<8x128xf32> to vector<8x4x32xf32>
    %81 = tpu.transpose %80, [1, 0, 2] : vector<8x4x32xf32> -> vector<4x8x32xf32>
    %82 = arith.truncf %75 : vector<4x8x32xf32> to vector<4x8x32xbf16>
    %83 = arith.truncf %78 : vector<4x8x32xf32> to vector<4x8x32xbf16>
    "tpu.trace_start"() <{level = 10 : i32, message = "hqd,hkd->hqk"}> : () -> ()
    %cst_27 = arith.constant dense<0.000000e+00> : vector<4x8x8xf32>
    %84 = tpu.matmul %82, %83, %cst_27 {dimension_numbers = #tpu.dot_dimension_numbers<[2], [2], [1], [1], [0, 0, 0, 1, 1, 1], [0], [0]>} : vector<4x8x32xbf16>, vector<4x8x32xbf16>, vector<4x8x8xf32> -> vector<4x8x8xf32>
    "tpu.trace_stop"() : () -> ()
    %c0_28 = arith.constant 0 : index
    %c0_29 = arith.constant 0 : index
    %85 = vector.load %arg4[%c0_28, %c0_29] : memref<8x8xf32, #tpu.memory_space<vmem>>, vector<8x8xf32>
    %86 = vector.shape_cast %85 : vector<8x8xf32> to vector<1x8x8xf32>
    %87 = vector.broadcast %86 : vector<1x8x8xf32> to vector<4x8x8xf32>
    %88 = arith.addf %84, %87 : vector<4x8x8xf32>
    %cst_30 = arith.constant dense<0xFF800000> : vector<4x8xf32>
    %89 = vector.multi_reduction <maximumf>, %88, %cst_30 [2] : vector<4x8x8xf32> to vector<4x8xf32>
    %90 = vector.shape_cast %89 : vector<4x8xf32> to vector<4x8x1xf32>
    %91 = vector.broadcast %90 : vector<4x8x1xf32> to vector<4x8x8xf32>
    %92 = arith.subf %88, %91 : vector<4x8x8xf32>
    %93 = math.exp %92 : vector<4x8x8xf32>
    %cst_31 = arith.constant dense<0.000000e+00> : vector<4x8xf32>
    %94 = vector.multi_reduction <add>, %93, %cst_31 [2] : vector<4x8x8xf32> to vector<4x8xf32>
    %95 = vector.shape_cast %94 : vector<4x8xf32> to vector<4x8x1xf32>
    %96 = tpu.reciprocal %95 {approx = true} : vector<4x8x1xf32> -> vector<4x8x1xf32>
    %97 = vector.broadcast %96 : vector<4x8x1xf32> to vector<4x8x8xf32>
    %98 = arith.mulf %93, %97 : vector<4x8x8xf32>
    %99 = arith.truncf %98 : vector<4x8x8xf32> to vector<4x8x8xbf16>
    %100 = arith.truncf %81 : vector<4x8x32xf32> to vector<4x8x32xbf16>
    "tpu.trace_start"() <{level = 10 : i32, message = "hqk,hkd->hqd"}> : () -> ()
    %cst_32 = arith.constant dense<0.000000e+00> : vector<4x8x32xf32>
    %101 = tpu.matmul %99, %100, %cst_32 {dimension_numbers = #tpu.dot_dimension_numbers<[2], [1], [1], [2], [0, 0, 0, 1, 1, 2], [0], [0]>} : vector<4x8x8xbf16>, vector<4x8x32xbf16>, vector<4x8x32xf32> -> vector<4x8x32xf32>
    "tpu.trace_stop"() : () -> ()
    %102 = tpu.transpose %101, [1, 0, 2] : vector<4x8x32xf32> -> vector<8x4x32xf32>
    %103 = vector.shape_cast %102 : vector<8x4x32xf32> to vector<8x128xf32>
    %104 = tpu.concatenate %69, %103 in 0 : vector<8x128xf32>, vector<8x128xf32> -> vector<16x128xf32>
    %105 = arith.truncf %104 : vector<16x128xf32> to vector<16x128xbf16>
    %c0_33 = arith.constant 0 : index
    %c0_34 = arith.constant 0 : index
    %c0_35 = arith.constant 0 : index
    %106 = vector.load %arg9[%c0_33, %c0_34, %c0_35] : memref<1x128x128xbf16, #tpu.memory_space<vmem>>, vector<1x128x128xbf16>
    %107 = vector.shape_cast %106 : vector<1x128x128xbf16> to vector<128x128xbf16>
    %cst_36 = arith.constant dense<0.000000e+00> : vector<16x128xf32>
    %108 = tpu.matmul %105, %107, %cst_36 {dimension_numbers = #tpu.dot_dimension_numbers<[1], [0], [0], [1], [0, 0, 1, 1], [], []>} : vector<16x128xbf16>, vector<128x128xbf16>, vector<16x128xf32> -> vector<16x128xf32>
    %c0_37 = arith.constant 0 : index
    %c0_38 = arith.constant 0 : index
    %c0_39 = arith.constant 0 : index
    %109 = vector.load %arg10[%c0_37, %c0_38, %c0_39] : memref<1x1x128xf32, #tpu.memory_space<vmem>>, vector<1x1x128xf32>
    %110 = vector.shape_cast %109 : vector<1x1x128xf32> to vector<1x128xf32>
    %111 = vector.broadcast %110 : vector<1x128xf32> to vector<16x128xf32>
    %112 = arith.addf %108, %111 : vector<16x128xf32>
    %113 = arith.addf %3, %112 : vector<16x128xf32>
    %c0_40 = arith.constant 0 : index
    %c0_41 = arith.constant 0 : index
    %c0_42 = arith.constant 0 : index
    %114 = vector.load %arg11[%c0_40, %c0_41, %c0_42] : memref<1x1x128xf32, #tpu.memory_space<vmem>>, vector<1x1x128xf32>
    %115 = vector.shape_cast %114 : vector<1x1x128xf32> to vector<1x128xf32>
    %c0_43 = arith.constant 0 : index
    %c0_44 = arith.constant 0 : index
    %c0_45 = arith.constant 0 : index
    %116 = vector.load %arg12[%c0_43, %c0_44, %c0_45] : memref<1x1x128xf32, #tpu.memory_space<vmem>>, vector<1x1x128xf32>
    %117 = vector.shape_cast %116 : vector<1x1x128xf32> to vector<1x128xf32>
    %cst_46 = arith.constant dense<0.000000e+00> : vector<16xf32>
    %118 = vector.multi_reduction <add>, %113, %cst_46 [1] : vector<16x128xf32> to vector<16xf32>
    %119 = vector.shape_cast %118 : vector<16xf32> to vector<16x1xf32>
    %cst_47 = arith.constant 1.280000e+02 : f32
    %120 = vector.broadcast %cst_47 : f32 to vector<16x1xf32>
    %121 = arith.divf %119, %120 : vector<16x1xf32>
    %122 = vector.broadcast %121 : vector<16x1xf32> to vector<16x128xf32>
    %123 = arith.subf %113, %122 : vector<16x128xf32>
    %124 = arith.mulf %123, %123 : vector<16x128xf32>
    %cst_48 = arith.constant dense<0.000000e+00> : vector<16xf32>
    %125 = vector.multi_reduction <add>, %124, %cst_48 [1] : vector<16x128xf32> to vector<16xf32>
    %126 = vector.shape_cast %125 : vector<16xf32> to vector<16x1xf32>
    %cst_49 = arith.constant 1.280000e+02 : f32
    %127 = vector.broadcast %cst_49 : f32 to vector<16x1xf32>
    %128 = arith.divf %126, %127 : vector<16x1xf32>
    %cst_50 = arith.constant 9.99999974E-6 : f32
    %129 = vector.broadcast %cst_50 : f32 to vector<16x1xf32>
    %130 = arith.addf %128, %129 : vector<16x1xf32>
    %131 = math.rsqrt %130 : vector<16x1xf32>
    %132 = vector.broadcast %131 : vector<16x1xf32> to vector<16x128xf32>
    %133 = arith.mulf %123, %132 : vector<16x128xf32>
    %134 = vector.broadcast %115 : vector<1x128xf32> to vector<16x128xf32>
    %135 = arith.mulf %133, %134 : vector<16x128xf32>
    %136 = vector.broadcast %117 : vector<1x128xf32> to vector<16x128xf32>
    %137 = arith.addf %135, %136 : vector<16x128xf32>
    %138 = arith.truncf %137 : vector<16x128xf32> to vector<16x128xbf16>
    %c0_51 = arith.constant 0 : index
    %c0_52 = arith.constant 0 : index
    %c0_53 = arith.constant 0 : index
    %139 = vector.load %arg13[%c0_51, %c0_52, %c0_53] : memref<1x128x512xbf16, #tpu.memory_space<vmem>>, vector<1x128x512xbf16>
    %140 = vector.shape_cast %139 : vector<1x128x512xbf16> to vector<128x512xbf16>
    %cst_54 = arith.constant dense<0.000000e+00> : vector<16x512xf32>
    %141 = tpu.matmul %138, %140, %cst_54 {dimension_numbers = #tpu.dot_dimension_numbers<[1], [0], [0], [1], [0, 0, 1, 1], [], []>} : vector<16x128xbf16>, vector<128x512xbf16>, vector<16x512xf32> -> vector<16x512xf32>
    %c0_55 = arith.constant 0 : index
    %c0_56 = arith.constant 0 : index
    %c0_57 = arith.constant 0 : index
    %142 = vector.load %arg14[%c0_55, %c0_56, %c0_57] : memref<1x1x512xf32, #tpu.memory_space<vmem>>, vector<1x1x512xf32>
    %143 = vector.shape_cast %142 : vector<1x1x512xf32> to vector<1x512xf32>
    %144 = vector.broadcast %143 : vector<1x512xf32> to vector<16x512xf32>
    %145 = arith.addf %141, %144 : vector<16x512xf32>
    %cst_58 = arith.constant 1.702000e+00 : f32
    %146 = vector.broadcast %cst_58 : f32 to vector<16x512xf32>
    %147 = arith.mulf %146, %145 : vector<16x512xf32>
    %148 = arith.negf %147 : vector<16x512xf32>
    %149 = math.exp %148 : vector<16x512xf32>
    %cst_59 = arith.constant 1.000000e+00 : f32
    %150 = vector.broadcast %cst_59 : f32 to vector<16x512xf32>
    %151 = arith.addf %150, %149 : vector<16x512xf32>
    %152 = arith.divf %150, %151 : vector<16x512xf32>
    %153 = arith.mulf %145, %152 : vector<16x512xf32>
    %154 = arith.truncf %153 : vector<16x512xf32> to vector<16x512xbf16>
    %c0_60 = arith.constant 0 : index
    %c0_61 = arith.constant 0 : index
    %c0_62 = arith.constant 0 : index
    %155 = vector.load %arg15[%c0_60, %c0_61, %c0_62] : memref<1x512x128xbf16, #tpu.memory_space<vmem>>, vector<1x512x128xbf16>
    %156 = vector.shape_cast %155 : vector<1x512x128xbf16> to vector<512x128xbf16>
    %cst_63 = arith.constant dense<0.000000e+00> : vector<16x128xf32>
    %157 = tpu.matmul %154, %156, %cst_63 {dimension_numbers = #tpu.dot_dimension_numbers<[1], [0], [0], [1], [0, 0, 1, 1], [], []>} : vector<16x512xbf16>, vector<512x128xbf16>, vector<16x128xf32> -> vector<16x128xf32>
    %c0_64 = arith.constant 0 : index
    %c0_65 = arith.constant 0 : index
    %c0_66 = arith.constant 0 : index
    %158 = vector.load %arg16[%c0_64, %c0_65, %c0_66] : memref<1x1x128xf32, #tpu.memory_space<vmem>>, vector<1x1x128xf32>
    %159 = vector.shape_cast %158 : vector<1x1x128xf32> to vector<1x128xf32>
    %160 = vector.broadcast %159 : vector<1x128xf32> to vector<16x128xf32>
    %161 = arith.addf %157, %160 : vector<16x128xf32>
    %162 = arith.addf %113, %161 : vector<16x128xf32>
    %c0_67 = arith.constant 0 : index
    %c0_68 = arith.constant 0 : index
    %163 = vector.load %arg21[%c0_67, %c0_68] : memref<16x128xf32, #tpu.memory_space<vmem>>, vector<16x128xf32>
    tpu.vector_store %arg21[%c0_67, %c0_68], %162 {strides = array<i32>} : memref<16x128xf32, #tpu.memory_space<vmem>>, vector<16x128xf32>,
    %c1_i32 = arith.constant 1 : i32
    %164 = arith.cmpi eq, %arg1, %c1_i32 : i32
    %165 = arith.extui %164 : i1 to i32
    %c0_i32_69 = arith.constant 0 : i32
    %166 = arith.cmpi ne, %165, %c0_i32_69 : i32
    scf.if %166 {
      %167 = vector.shape_cast %162 : vector<16x128xf32> to vector<2x8x128xf32>
      %c0_70 = arith.constant 0 : index
      %c0_71 = arith.constant 0 : index
      %168 = vector.load %arg3[%c0_70, %c0_71] : memref<2x8xf32, #tpu.memory_space<vmem>>, vector<2x8xf32>
      %169 = vector.shape_cast %168 : vector<2x8xf32> to vector<2x8x1xf32>
      %170 = vector.broadcast %169 : vector<2x8x1xf32> to vector<2x8x128xf32>
      %171 = arith.mulf %167, %170 : vector<2x8x128xf32>
      %cst_72 = arith.constant dense<0.000000e+00> : vector<2x128xf32>
      %172 = vector.multi_reduction <add>, %171, %cst_72 [1] : vector<2x8x128xf32> to vector<2x128xf32>
      %c0_73 = arith.constant 0 : index
      %c0_74 = arith.constant 0 : index
      %173 = vector.load %arg17[%c0_73, %c0_74] : memref<1x128xf32, #tpu.memory_space<vmem>>, vector<1x128xf32>
      %c0_75 = arith.constant 0 : index
      %c0_76 = arith.constant 0 : index
      %174 = vector.load %arg18[%c0_75, %c0_76] : memref<1x128xf32, #tpu.memory_space<vmem>>, vector<1x128xf32>
      %cst_77 = arith.constant dense<0.000000e+00> : vector<2xf32>
      %175 = vector.multi_reduction <add>, %172, %cst_77 [1] : vector<2x128xf32> to vector<2xf32>
      %176 = vector.shape_cast %175 : vector<2xf32> to vector<2x1xf32>
      %cst_78 = arith.constant 1.280000e+02 : f32
      %177 = vector.broadcast %cst_78 : f32 to vector<2x1xf32>
      %178 = arith.divf %176, %177 : vector<2x1xf32>
      %179 = vector.broadcast %178 : vector<2x1xf32> to vector<2x128xf32>
      %180 = arith.subf %172, %179 : vector<2x128xf32>
      %181 = arith.mulf %180, %180 : vector<2x128xf32>
      %cst_79 = arith.constant dense<0.000000e+00> : vector<2xf32>
      %182 = vector.multi_reduction <add>, %181, %cst_79 [1] : vector<2x128xf32> to vector<2xf32>
      %183 = vector.shape_cast %182 : vector<2xf32> to vector<2x1xf32>
      %cst_80 = arith.constant 1.280000e+02 : f32
      %184 = vector.broadcast %cst_80 : f32 to vector<2x1xf32>
      %185 = arith.divf %183, %184 : vector<2x1xf32>
      %cst_81 = arith.constant 9.99999974E-6 : f32
      %186 = vector.broadcast %cst_81 : f32 to vector<2x1xf32>
      %187 = arith.addf %185, %186 : vector<2x1xf32>
      %188 = math.rsqrt %187 : vector<2x1xf32>
      %189 = vector.broadcast %188 : vector<2x1xf32> to vector<2x128xf32>
      %190 = arith.mulf %180, %189 : vector<2x128xf32>
      %191 = vector.broadcast %173 : vector<1x128xf32> to vector<2x128xf32>
      %192 = arith.mulf %190, %191 : vector<2x128xf32>
      %193 = vector.broadcast %174 : vector<1x128xf32> to vector<2x128xf32>
      %194 = arith.addf %192, %193 : vector<2x128xf32>
      %195 = arith.truncf %194 : vector<2x128xf32> to vector<2x128xbf16>
      %c0_82 = arith.constant 0 : index
      %c0_83 = arith.constant 0 : index
      %196 = vector.load %arg19[%c0_82, %c0_83] : memref<128x128xbf16, #tpu.memory_space<vmem>>, vector<128x128xbf16>
      %cst_84 = arith.constant dense<0.000000e+00> : vector<2x128xf32>
      %197 = tpu.matmul %195, %196, %cst_84 {dimension_numbers = #tpu.dot_dimension_numbers<[1], [0], [0], [1], [0, 0, 1, 1], [], []>} : vector<2x128xbf16>, vector<128x128xbf16>, vector<2x128xf32> -> vector<2x128xf32>
      %c0_85 = arith.constant 0 : index
      %c0_86 = arith.constant 0 : index
      %198 = vector.load %arg20[%c0_85, %c0_86] : memref<2x128xf32, #tpu.memory_space<vmem>>, vector<2x128xf32>
      tpu.vector_store %arg20[%c0_85, %c0_86], %197 {strides = array<i32>} : memref<2x128xf32, #tpu.memory_space<vmem>>, vector<2x128xf32>,
    } else {
    }
    return
  }
  func.func @transform_0(%arg0: i32, %arg1: i32) -> (i32, i32, i32) {
    %c0_i32 = arith.constant 0 : i32
    %c0_i32_0 = arith.constant 0 : i32
    %c0_i32_1 = arith.constant 0 : i32
    return %arg0, %c0_i32, %c0_i32_0 : i32, i32, i32
  }
  func.func @transform_1(%arg0: i32, %arg1: i32) -> (i32, i32) {
    %c0_i32 = arith.constant 0 : i32
    %c0_i32_0 = arith.constant 0 : i32
    return %arg0, %c0_i32 : i32, i32
  }
  func.func @transform_2(%arg0: i32, %arg1: i32) -> (i32, i32) {
    %c0_i32 = arith.constant 0 : i32
    %c0_i32_0 = arith.constant 0 : i32
    %c0_i32_1 = arith.constant 0 : i32
    return %c0_i32, %c0_i32_0 : i32, i32
  }
  func.func @transform_3(%arg0: i32, %arg1: i32) -> (i32, i32, i32) {
    %c0_i32 = arith.constant 0 : i32
    %c0_i32_0 = arith.constant 0 : i32
    %c0_i32_1 = arith.constant 0 : i32
    return %arg1, %c0_i32, %c0_i32_0 : i32, i32, i32
  }
  func.func @transform_4(%arg0: i32, %arg1: i32) -> (i32, i32, i32) {
    %c0_i32 = arith.constant 0 : i32
    %c0_i32_0 = arith.constant 0 : i32
    %c0_i32_1 = arith.constant 0 : i32
    return %arg1, %c0_i32, %c0_i32_0 : i32, i32, i32
  }
  func.func @transform_5(%arg0: i32, %arg1: i32) -> (i32, i32, i32) {
    %c0_i32 = arith.constant 0 : i32
    %c0_i32_0 = arith.constant 0 : i32
    %c0_i32_1 = arith.constant 0 : i32
    return %arg1, %c0_i32, %c0_i32_0 : i32, i32, i32
  }
  func.func @transform_6(%arg0: i32, %arg1: i32) -> (i32, i32, i32) {
    %c0_i32 = arith.constant 0 : i32
    %c0_i32_0 = arith.constant 0 : i32
    %c0_i32_1 = arith.constant 0 : i32
    return %arg1, %c0_i32, %c0_i32_0 : i32, i32, i32
  }
  func.func @transform_7(%arg0: i32, %arg1: i32) -> (i32, i32, i32) {
    %c0_i32 = arith.constant 0 : i32
    %c0_i32_0 = arith.constant 0 : i32
    %c0_i32_1 = arith.constant 0 : i32
    return %arg1, %c0_i32, %c0_i32_0 : i32, i32, i32
  }
  func.func @transform_8(%arg0: i32, %arg1: i32) -> (i32, i32, i32) {
    %c0_i32 = arith.constant 0 : i32
    %c0_i32_0 = arith.constant 0 : i32
    %c0_i32_1 = arith.constant 0 : i32
    return %arg1, %c0_i32, %c0_i32_0 : i32, i32, i32
  }
  func.func @transform_9(%arg0: i32, %arg1: i32) -> (i32, i32, i32) {
    %c0_i32 = arith.constant 0 : i32
    %c0_i32_0 = arith.constant 0 : i32
    %c0_i32_1 = arith.constant 0 : i32
    return %arg1, %c0_i32, %c0_i32_0 : i32, i32, i32
  }
  func.func @transform_10(%arg0: i32, %arg1: i32) -> (i32, i32, i32) {
    %c0_i32 = arith.constant 0 : i32
    %c0_i32_0 = arith.constant 0 : i32
    %c0_i32_1 = arith.constant 0 : i32
    return %arg1, %c0_i32, %c0_i32_0 : i32, i32, i32
  }
  func.func @transform_11(%arg0: i32, %arg1: i32) -> (i32, i32, i32) {
    %c0_i32 = arith.constant 0 : i32
    %c0_i32_0 = arith.constant 0 : i32
    %c0_i32_1 = arith.constant 0 : i32
    return %arg1, %c0_i32, %c0_i32_0 : i32, i32, i32
  }
  func.func @transform_12(%arg0: i32, %arg1: i32) -> (i32, i32, i32) {
    %c0_i32 = arith.constant 0 : i32
    %c0_i32_0 = arith.constant 0 : i32
    %c0_i32_1 = arith.constant 0 : i32
    return %arg1, %c0_i32, %c0_i32_0 : i32, i32, i32
  }
  func.func @transform_13(%arg0: i32, %arg1: i32) -> (i32, i32, i32) {
    %c0_i32 = arith.constant 0 : i32
    %c0_i32_0 = arith.constant 0 : i32
    %c0_i32_1 = arith.constant 0 : i32
    return %arg1, %c0_i32, %c0_i32_0 : i32, i32, i32
  }
  func.func @transform_14(%arg0: i32, %arg1: i32) -> (i32, i32, i32) {
    %c0_i32 = arith.constant 0 : i32
    %c0_i32_0 = arith.constant 0 : i32
    %c0_i32_1 = arith.constant 0 : i32
    return %arg1, %c0_i32, %c0_i32_0 : i32, i32, i32
  }
  func.func @transform_15(%arg0: i32, %arg1: i32) -> (i32, i32) {
    %c0_i32 = arith.constant 0 : i32
    %c0_i32_0 = arith.constant 0 : i32
    %c0_i32_1 = arith.constant 0 : i32
    return %c0_i32, %c0_i32_0 : i32, i32
  }
  func.func @transform_16(%arg0: i32, %arg1: i32) -> (i32, i32) {
    %c0_i32 = arith.constant 0 : i32
    %c0_i32_0 = arith.constant 0 : i32
    %c0_i32_1 = arith.constant 0 : i32
    return %c0_i32, %c0_i32_0 : i32, i32
  }
  func.func @transform_17(%arg0: i32, %arg1: i32) -> (i32, i32) {
    %c0_i32 = arith.constant 0 : i32
    %c0_i32_0 = arith.constant 0 : i32
    %c0_i32_1 = arith.constant 0 : i32
    return %c0_i32, %c0_i32_0 : i32, i32
  }
  func.func @transform_18(%arg0: i32, %arg1: i32) -> (i32, i32) {
    %c0_i32 = arith.constant 0 : i32
    %c0_i32_0 = arith.constant 0 : i32
    return %arg0, %c0_i32 : i32, i32
  }
}

</mosaic_0001>

<bundles_post_ra>
// kernel: clip_text_encode.1
= control target key start
LH: loop header
LB: loop body
LE: loop exit
PB: predicated region body
PF: predicated region fallthrough
CT: control target
= control target key end

     0   :  { %s6473_s0 = inlined_call_operand.vmem [shape: f32[2,8,128], index: 0, kind: input, shape index: {}]   ;;  %s6474_s1 = inlined_call_operand.vmem [shape: f32[2,8], index: 1, kind: input, shape index: {}]   ;;  %s6475_s2 = inlined_call_operand.vmem [shape: f32[8,8], index: 2, kind: input, shape index: {}]   ;;  %s6476_s3 = inlined_call_operand.vmem [shape: f32[2,1,128], index: 3, kind: input, shape index: {}]   ;;  %s6477_s4 = inlined_call_operand.vmem [shape: f32[2,1,128], index: 4, kind: input, shape index: {}]   ;;  %s6478_s5 = inlined_call_operand.hbm [shape: bf16[2,128,384], index: 5, kind: input, shape index: {}]   ;;  %s6479_s6 = inlined_call_operand.vmem [shape: f32[2,1,384], index: 6, kind: input, shape index: {}]   ;;  %s6480_s7 = inlined_call_operand.vmem [shape: bf16[2,128,128], index: 7, kind: input, shape index: {}]   ;;  %s6481_s8 = inlined_call_operand.vmem [shape: f32[2,1,128], index: 8, kind: input, shape index: {}]   ;;  %s6482_s9 = inlined_call_operand.vmem [shape: f32[2,1,128], index: 9, kind: input, shape index: {}]   ;;  %s6483_s10 = inlined_call_operand.vmem [shape: f32[2,1,128], index: 10, kind: input, shape index: {}]   ;;  %s6484_s11 = inlined_call_operand.hbm [shape: bf16[2,128,512], index: 11, kind: input, shape index: {}]   ;;  %s6485_s12 = inlined_call_operand.vmem [shape: f32[2,1,512], index: 12, kind: input, shape index: {}]   ;;  %s6486_s13 = inlined_call_operand.hbm [shape: bf16[2,512,128], index: 13, kind: input, shape index: {}]   ;;  %s6487_s14 = inlined_call_operand.vmem [shape: f32[2,1,128], index: 14, kind: input, shape index: {}]   ;;  %s6488_s15 = inlined_call_operand.vmem [shape: f32[1,128], index: 15, kind: input, shape index: {}]   ;;  %s6489_s16 = inlined_call_operand.vmem [shape: f32[1,128], index: 16, kind: input, shape index: {}]   ;;  %s6490_s17 = inlined_call_operand.vmem [shape: bf16[128,128], index: 17, kind: input, shape index: {}]   ;;  %s6491_s18 = inlined_call_operand.hbm [shape: f32[2,128], index: 18, kind: output, shape index: {}]  }
   0x1   :  { %6503 = sst [smem:[#allocation19_spill]] %s6473_s0 }
   0x2   :  { %6504 = sst [smem:[#allocation20_spill]] %s6474_s1 }
   0x3   :  { %6505 = sst [smem:[#allocation21_spill]] %s6475_s2 }
   0x4   :  { %6506 = sst [smem:[#allocation22_spill]] %s6478_s5 }
   0x5   :  { %6507 = sst [smem:[#allocation23_spill]] %s6480_s7 }
   0x6   :  { %6508 = sst [smem:[#allocation24_spill]] %s6483_s10 }
   0x7   :  { %6509 = sst [smem:[#allocation25_spill]] %s6484_s11 }
   0x8   :  { %6510 = sst [smem:[#allocation26_spill]] %s6485_s12 }
   0x9   :  { %6511 = sst [smem:[#allocation27_spill]] %s6486_s13 }
   0xa   :  { %6512 = sst [smem:[#allocation28_spill]] %s6487_s14 }
   0xb   :  { %6513 = sst [smem:[#allocation29_spill]] %s6488_s15 }
   0xc   :  { %6514 = sst [smem:[#allocation30_spill]] %s6489_s16 }
   0xd   :  { %6515 = sst [smem:[#allocation31_spill]] %s6490_s17 }
   0xe   :  { %6516 = sst [smem:[#allocation32_spill]] %s6491_s18 }
   0xf   :  { %23 = vsyncpa [#allocation4], 0 }
  0x10   :  { %25 = vsyncpa [#allocation4 + $0x1], 0 }
  0x11   :  { %26 = vsyncpa [#allocation7], 0 }
  0x12   :  { %28 = vsyncpa [#allocation7 + $0x1], 0 }
  0x13   :  { %29 = vsyncpa [#allocation5], 0  ;;  %s5557_s27 = smov 0   ;;  %s5559_s28 = smov 0  }
  0x14   :  { %s5561_s29 = smov 0   ;;  %s5563_s30 = smov 0  }
  0x15   :  { %s5565_s0 = smov 0   ;;  %s5567_s19 = smov 0  }
  0x16 LB: > { %6517 = sst [smem:[#allocation13_spill]] %s5424_s28  ;;  %s5586_s1 = sadd.s32 4294967295, %s5440_s19   ;;  %s5440_s19 = sphi %s5567_s19, %s35_s19   ;;  %s5436_s0 = sphi %s5565_s0, %s6555_s0   ;;  %s5432_s30 = sphi %s5563_s30, %s6554_s30   ;;  %s5428_s29 = sphi %s5561_s29, %s6553_s29   ;;  %s5424_s28 = sphi %s5559_s28, %s6552_s28   ;;  %s5420_s27 = sphi %s5557_s27, %s6551_s27  }
  0x17   : > { %6518 = sst [smem:[#allocation14_spill]] %s5428_s29  ;;  %s44_s20 = sadd.s32 1, %s5436_s0 }
  0x18   : > { %6519 = sst [smem:[#allocation15_spill]] %s5436_s0  ;;  %p45_p0 = scmp.ge.s32.totalorder %s44_s20, 2 }
  0x19   : > { %6520 = sst [smem:[#allocation16_spill]] %s5440_s19  ;;  %s179_s21 = sadd.s32 1, %s5428_s29 }
  0x1a   : > { %p186_p1 = scmp.ne.s32.totalorder %s5428_s29, %s5424_s28  ;;  %p187_p2 = scmp.eq.s32.totalorder %s5440_s19, 0 }
  0x1b   : > { %s6557_s20 = smov (%p45_p0, %s44_s20), 0  ;;  %p192_p4 = scmp.ne.s32.totalorder %s5424_s28, %s5420_s27 }
  0x1c   : > { %6521 = sst [smem:[#allocation17_spill]] %s6557_s20  ;;  %p188_p3 = por %p187_p2, %p186_p1 }
  0x1d   : > { %s176_s22 = ssub.s32 %s5436_s0, %s6557_s20  ;;  %p193_p5 = scmp.eq.s32.totalorder %s5586_s1, 0 }
  0x1e   : > { %p177_p6 = scmp.eq.s32.totalorder %s176_s22, 0  ;;  %p4979_p8 = scmp.lt.s32.totalorder %s5440_s19, 2 }
  0x1f   : > { %p5599_p7 = por %p193_p5, %p192_p4  ;;  %s5608_s24 = sand.u32 1, %s5428_s29  }
  0x20   : > { %s5605_s23 = scalar_select %p177_p6, %s5428_s29, %s179_s21  }
  0x21   : > { %s6522_s2 = scalar_select %p5599_p7, 1, 0 }
  0x22   : > { %6523 = sst [smem:[#allocation18_spill]] %s5605_s23  ;;  %p5610_p9 = pnand %p4979_p8, %p188_p3 }
  0x23   : > { %s633_s26 = sand.u32 1, %s5440_s19   ;;  %s6497_s27 = sshll.u32 %s5608_s24, 8 }
  0x24   : > { %s6498_s20 = sshll.u32 %s5436_s0, 12  ;;  %s6525_s11 = sld [smem:[#allocation25_spill]] }
  0x25   : > { %s637_s21 = scalar_lea.vmem [#allocation6], %s6497_s27  ;;  %s5628_s29 = scalar_lea.sflag [#allocation7], %s633_s26 }
  0x26   : > { %s644_s23 = sshll.u32 %s637_s21, 4  ;;  %p5634_p11 = pneg %p5610_p9  ;;  %s5626_s23 = int_to_ptr.vmem [resolvable:$true] %s644_s23 }
  0x2a   : > { %s5622_s16 = scalar_lea.hbm %s6525_s11, %s6498_s20  ;;  %s5271_s27 = scalar_lea.hbm %s6525_s11, 8192 }
  0x2b   : > { %s5266_s15 = scalar_lea.hbm %s5622_s16, 4096  ;;  %p5272_p0 = scmp.lt.u32.totalorder %s5622_s16, %s6525_s11 }
  0x2c   : > { %p5267_p10 = scmp.ne.s32.totalorder %s5622_s16, %s5266_s15  ;;  %p5273_p1 = scmp.lt.u32.totalorder %s5271_s27, %s5266_s15 }
  0x2d   : > { %p5275_p3 = scmp.lt.u32.totalorder %s5266_s15, %s5622_s16 }
  0x2e   : > { %p5269_p12 = pnand %p5634_p11, %p5267_p10  ;;  %p5274_p2 = por %p5273_p1, %p5272_p0 }
  0x30   : > { %p5270_p13 = pneg %p5269_p12  ;;  %p5276_p4 = por %p5275_p3, %p5274_p2 }
  0x32   : > { %p5277_p5 = pnand %p5276_p4, %p5270_p13 }
  0x34   : > { %5280 = shalt.err (!%p5277_p5)
}
  0x35   : > { %s5281_s26 = scalar_lea.vmem %s5626_s23, 4096  ;;  %s5442_s18 = smov [#allocation6]  }
  0x36   : > { %p5282_p6 = scmp.ne.s32.totalorder %s5626_s23, %s5281_s26  ;;  %s5286_s22 = sshll.u32 %s5442_s18, 4  ;;  %s5287_s22 = int_to_ptr.vmem [resolvable:$false] %s5286_s22 }
  0x37   : > { %s5288_s20 = scalar_lea.vmem %s5287_s22, 8192  ;;  %p5289_p12 = scmp.lt.s32.totalorder %s5626_s23, %s5287_s22 }
  0x38   : > { %p5284_p8 = pnand %p5282_p6, %p5634_p11  ;;  %p5290_p7 = scmp.lt.s32.totalorder %s5288_s20, %s5281_s26 }
  0x3a   : > { %p5285_p10 = pneg %p5284_p8  ;;  %p5291_p0 = por %p5290_p7, %p5289_p12 }
  0x3c   : > { %p5292_p1 = pnand %p5291_p0, %p5285_p10 }
  0x3e   : > { %5295 = shalt.err (!%p5292_p1)
}
  0x3f   : > { %s5443_s15 = smov 256   ;;  %s5444_s27 = smov 16  }
  0x40   : > { %4975 = dma.hbm_to_vmem [thread:$0]  (!%p5610_p9), %s5622_s16, 4096, %s5626_s23, %s5628_s29, %s5443_s15, %s5443_s15, %s5444_s27  }
  0x41   : > { %s6527_s21 = sshll.u32 %s5436_s0, 12  ;;  %s6528_s13 = sld [smem:[#allocation27_spill]] }
  0x42   : > { %s6529_s20 = sshll.u32 %s5608_s24, 8  ;;  %p4529_p7 = scmp.ge.s32.totalorder %s5440_s19, 1 }
  0x43   : > { %s665_s11 = scalar_lea.vmem [#allocation8], %s6529_s20  ;;  %p686_p13 = scmp.lt.s32.totalorder %s5440_s19, 3 }
  0x44   : > { %s672_s14 = sshll.u32 %s665_s11, 4  ;;  %s4955_s10 = smul.u32 192, %s5608_s24  ;;  %s5667_s14 = int_to_ptr.vmem [resolvable:$true] %s672_s14 }
  0x45   : > { %p5671_p2 = pnand %p4529_p7, %p686_p13  ;;  %s4956_s16 = smul.u32 3072, %s5436_s0 }
  0x46   : > { %s6531_s5 = sld [smem:[#allocation22_spill]]  ;;  %s583_s11 = scalar_lea.vmem [#allocation3], %s4955_s10 }
  0x47   : > { %s5663_s22 = scalar_lea.hbm %s6528_s13, %s6527_s21  ;;  %s590_s21 = sshll.u32 %s583_s11, 4  ;;  %s5682_s21 = int_to_ptr.vmem [resolvable:$true] %s590_s21 }
  0x48   : > { %s6530_s12 = scalar_select %p5671_p2, 1, 0 }
  0x49   : > { %s580_s26 = scalar_lea.sflag [#allocation4], %s5608_s24 }
  0x4c   : > { %s5680_s27 = scalar_lea.hbm %s6531_s5, %s4956_s16  ;;  %s5301_s23 = scalar_lea.hbm %s6531_s5, 6144 }
  0x4d   : > { %s5296_s18 = scalar_lea.hbm %s5680_s27, 3072  ;;  %p5302_p6 = scmp.lt.u32.totalorder %s5680_s27, %s6531_s5 }
  0x4e   : > { %p5297_p3 = scmp.ne.s32.totalorder %s5680_s27, %s5296_s18  ;;  %p5303_p8 = scmp.lt.u32.totalorder %s5301_s23, %s5296_s18 }
  0x4f   : > { %p5305_p12 = scmp.lt.u32.totalorder %s5296_s18, %s5680_s27 }
  0x50   : > { %p5299_p4 = pnand %p5297_p3, %p5634_p11  ;;  %p5304_p10 = por %p5303_p8, %p5302_p6 }
  0x52   : > { %p5300_p5 = pneg %p5299_p4  ;;  %p5306_p0 = por %p5305_p12, %p5304_p10 }
  0x54   : > { %p5307_p1 = pnand %p5306_p0, %p5300_p5 }
  0x56   : > { %5310 = shalt.err (!%p5307_p1)
}
  0x57   : > { %s5311_s10 = scalar_lea.vmem %s5682_s21, 3072  ;;  %s5445_s0 = smov [#allocation3]  }
  0x58   : > { %p5312_p7 = scmp.ne.s32.totalorder %s5682_s21, %s5311_s10  ;;  %s5316_s11 = sshll.u32 %s5445_s0, 4  ;;  %s5317_s11 = int_to_ptr.vmem [resolvable:$false] %s5316_s11 }
  0x59   : > { %s5318_s20 = scalar_lea.vmem %s5317_s11, 6144  ;;  %p5319_p4 = scmp.lt.s32.totalorder %s5682_s21, %s5317_s11 }
  0x5a   : > { %p5314_p13 = pnand %p5312_p7, %p5634_p11  ;;  %p5320_p2 = scmp.lt.s32.totalorder %s5318_s20, %s5311_s10 }
  0x5c   : > { %p5315_p3 = pneg %p5314_p13  ;;  %p5321_p6 = por %p5320_p2, %p5319_p4 }
  0x5e   : > { %p5322_p8 = pnand %p5321_p6, %p5315_p3 }
  0x60   : > { %5325 = shalt.err (!%p5322_p8)
}
  0x61   : > { %s5446_s18 = smov 192   ;;  %s5447_s23 = smov 12  }
  0x62   : > { %4972 = dma.hbm_to_vmem [thread:$0]  (!%p5610_p9), %s5680_s27, 3072, %s5682_s21, %s580_s26, %s5446_s18, %s5446_s18, %s5447_s23  }
  0x63   : > { %s5326_s16 = scalar_lea.hbm %s5663_s22, 4096  ;;  %s5331_s0 = scalar_lea.hbm %s6528_s13, 8192 }
  0x64   : > { %p5327_p5 = scmp.ne.s32.totalorder %s5663_s22, %s5326_s16  ;;  %p5332_p12 = scmp.lt.u32.totalorder %s5663_s22, %s6528_s13 }
  0x65   : > { %p5333_p0 = scmp.lt.u32.totalorder %s5331_s0, %s5326_s16  ;;  %p5335_p7 = scmp.lt.u32.totalorder %s5326_s16, %s5663_s22 }
  0x66   : > { %p5329_p2 = pnand %p5327_p5, %p5634_p11 }
  0x67   : > { %p5334_p1 = por %p5333_p0, %p5332_p12 }
  0x68   : > { %p5330_p10 = pneg %p5329_p2 }
  0x69   : > { %p5336_p13 = por %p5335_p7, %p5334_p1 }
  0x6b   : > { %p5337_p3 = pnand %p5336_p13, %p5330_p10 }
  0x6d   : > { %5340 = shalt.err (!%p5337_p3)
}
  0x6e   : > { %s5341_s24 = scalar_lea.vmem %s5667_s14, 4096  ;;  %s5448_s27 = smov [#allocation8]  }
  0x6f   : > { %p5342_p4 = scmp.ne.s32.totalorder %s5667_s14, %s5341_s24  ;;  %s5346_s21 = sshll.u32 %s5448_s27, 4  ;;  %s5347_s21 = int_to_ptr.vmem [resolvable:$false] %s5346_s21 }
  0x70   : > { %s5348_s26 = scalar_lea.vmem %s5347_s21, 8192  ;;  %p5349_p5 = scmp.lt.s32.totalorder %s5667_s14, %s5347_s21 }
  0x71   : > { %p5344_p6 = pnand %p5342_p4, %p5634_p11  ;;  %p5350_p2 = scmp.lt.s32.totalorder %s5348_s26, %s5341_s24 }
  0x73   : > { %p5345_p8 = pneg %p5344_p6  ;;  %p5351_p12 = por %p5350_p2, %p5349_p5 }
  0x75   : > { %p5352_p0 = pnand %p5351_p12, %p5345_p8 }
  0x77   : > { %5355 = shalt.err (!%p5352_p0)
}
  0x78   : > { %s5449_s18 = smov 64   ;;  %s5450_s23 = smov 4  }
  0x79   : > { %4978 = dma.hbm_to_vmem [thread:$0]  (!%p5610_p9), %s5663_s22, 4096, %s5667_s14, %s5628_s29, %s5449_s18, %s5449_s18, %s5450_s23  }
  0x7a   : > { %p6532_p11 = scmp.ne.s32.totalorder %s6530_s12, 0 }
  0x7b   : > { %s692_s17 = sand.u32 (!%p6532_p11), 1, %s5424_s28   ;;  %p6533_p10 = scmp.ne.s32.totalorder (!%p6532_p11), %s6522_s2, 0 }
  0x7c   : > { %690 = sbr.rel (%p6532_p11) target bundleno = 3942 (0xf66), region = 92  ;;  %s693_s15 = scalar_lea.sflag (!%p6532_p11), [#allocation4], %s692_s17 }
  0x7d   : > { %s4957_s16 = smul.u32 (!%p6532_p11), 192, %s692_s17 }
  0x7f   : > { %s5733_s10 = scalar_lea.vmem (!%p6532_p11), [#allocation3], %s4957_s16 }
  0x83   : > { %5407 = dma.done.wait (%p6533_p10), %s693_s15, 3072  }
  0x84   : > { %5409 = vsyncadd (%p6533_p10), %s693_s15, 4294964224  ;;  %s701_s0 = sand.u32 1, %s5586_s1   ;;  %s4530_s25 = sshll.u32 %s692_s17, 8 }
  0x85   : > { %s702_s14 = scalar_lea.sflag [#allocation7], %s701_s0  ;;  %s5740_s29 = scalar_lea.vmem [#allocation6], %s4530_s25 }
  0x86   : > { %5411 = dma.done.wait (%p6533_p10), %s702_s14, 8192  }
  0x87   : > { %5413 = vsyncadd (%p6533_p10), %s702_s14, 4294959104  ;;  %p822_p9 = scmp.lt.s32.totalorder %s5432_s30, 1  ;;  %s6534_s7 = sld [smem:[#allocation23_spill]] }
  0x88   : > { %s6535_s13 = sld [smem:[#allocation24_spill]]  ;;  %s6537_s0 = sld [smem:[#allocation28_spill]] }
  0x89   : > { %s5748_s12 = scalar_select %p822_p9, %s5432_s30, 1 }
  0x8a   : > { %p4535_p1 = scmp.ne.s32.totalorder %s5432_s30, 0 }
  0x8b   : > { %s4958_s21 = smul.u32 3, %s5748_s12  ;;  %s4695_s26 = sshll.u32 %s5748_s12, 6 }
  0x8c   : > { %s842_s2 = scalar_lea.vmem %s6482_s9, %s5748_s12  ;;  %s4534_s18 = sshll.u32 %s5748_s12, 2 }
  0x8d   : > { %s5763_s17 = scalar_lea.vmem %s6534_s7, %s4695_s26  ;;  %s5772_s11 = scalar_lea.vmem %s6479_s6, %s4958_s21 }
  0x8e   : > { %s845_s28 = scalar_lea.vmem %s6535_s13, %s5748_s12  ;;  %s6536_s7 = sld [smem:[#allocation26_spill]] }
  0x8f   : > { %s852_s14 = scalar_lea.vmem %s6537_s0, %s5748_s12  ;;  %s5792_s21 = scalar_lea.vmem [#allocation8], %s4530_s25 }
  0x90   : > { %857 = sbr.rel (%p4535_p1) target bundleno = 152 (0x98), region = 108  ;;  %s6538_s22 = sld [smem:[#allocation19_spill]] (!%p4535_p1) }
  0x94   : > { %s5786_s19 = scalar_lea.vmem %s6536_s7, %s4534_s18 }
  0x96   : > { %v858_v0 = vld [vmem:[%s6538_s22] sm:$0xff] (!%p4535_p1)  ;;  %v859_v1 = vld [vmem:[%s6538_s22 + $0x8] sm:$0xff] (!%p4535_p1) }
  0x97   : > { %860 = vst [vmem:[#allocation2] sm:$0xff] %v858_v0  ;;  %861 = vst [vmem:[#allocation2 + $0x8] sm:$0xff] %v859_v1 }
  0x98 PF: > { %v5062_v4 = vld [vmem:[%s5733_s10 + $0x4] ss:$12 sps:$4 sm:$0xff]   ;;  %v5064_v5 = vld [vmem:[%s5733_s10] ss:$12 sps:$4 sm:$0xff]   ;;  %v5451_v6 = vmov 0.0   ;;  %v5452_v32 = vmov 0   ;;  %s6539_s25 = scalar_lea.vmem %s6476_s3, %s5748_s12  ;;  %s6540_s18 = scalar_lea.vmem %s6477_s4, %s5748_s12  ;;  %v940_v55 = vlaneseq }
  0x99   : > { %4799 = vmatprep.subr.bf16.mxu1 %v5451_v6  ;;  %v5065_v7 = vld [vmem:[%s5733_s10 + $0x8] ss:$12 sps:$4 sm:$0xff]   ;;  %1083 = vmatprep.subr.bf16.mxu0 %v5062_v4  ;;  %v5068_v17 = vld [vmem:[%s5733_s10 + $0x18] ss:$12 sps:$4 sm:$0xff]   ;;  %v5069_v18 = vld [vmem:[%s5733_s10 + $0x20] ss:$12 sps:$4 sm:$0xff]   ;;  %s6542_s13 = scalar_lea.vmem %s6481_s8, %s5748_s12 }
  0x9a   : > { %v5066_v8 = vld [vmem:[%s5733_s10 + $0x1c] ss:$12 sps:$4 sm:$0xff]   ;;  %1084 = vmatpush1.bf16.msra.mxu0 %v5064_v5  ;;  %4800 = vmatpush3.bf16.msra.mxu1 %v5065_v7  ;;  %v5070_v19 = vld [vmem:[%s5733_s10 + $0x34] ss:$12 sps:$4 sm:$0xff]   ;;  %v5073_v21 = vld [vmem:[%s5733_s10 + $0x38] ss:$12 sps:$4 sm:$0xff]  }
  0x9b   : > { %1085 = vmatprep.subr.bf16.mxu0 %v5066_v8  ;;  %4801 = vmatprep.subr.bf16.mxu1 %v5451_v6  ;;  %v5072_v20 = vld [vmem:[%s5733_s10 + $0x30] ss:$12 sps:$4 sm:$0xff]   ;;  %v5074_v22 = vld [vmem:[%s5733_s10 + $0x4c] ss:$12 sps:$4 sm:$0xff]   ;;  %v5076_v23 = vld [vmem:[%s5733_s10 + $0x48] ss:$12 sps:$4 sm:$0xff]  }
  0x9c   : > { %v5077_v24 = vld [vmem:[%s5733_s10 + $0x50] ss:$12 sps:$4 sm:$0xff]   ;;  %v5080_v26 = vld [vmem:[%s5733_s10 + $0x60] ss:$12 sps:$4 sm:$0xff]   ;;  %v5081_v27 = vld [vmem:[%s5733_s10 + $0x68] ss:$12 sps:$4 sm:$0xff]   ;;  %1115 = vmatprep.mubr.bf16.mxu0 %v5452_v32 }
  0x9d   : > { %v5078_v25 = vld [vmem:[%s5733_s10 + $0x64] ss:$12 sps:$4 sm:$0xff]   ;;  %v5082_v28 = vld [vmem:[%s5733_s10 + $0x7c] ss:$12 sps:$4 sm:$0xff]   ;;  %v5085_v30 = vld [vmem:[%s5733_s10 + $0x80] ss:$12 sps:$4 sm:$0xff]  }
  0x9e   : > { %v862_v2 = vld [vmem:[#allocation2] sm:$0xff]  ;;  %v863_v3 = vld [vmem:[#allocation2 + $0x8] sm:$0xff]  ;;  %1086 = vmatpush1.bf16.msra.mxu0 %v5068_v17  ;;  %4802 = vmatpush3.bf16.msra.mxu1 %v5069_v18  ;;  %vm5453_vm0 = vmmov 0   ;;  %v5862_v56 = vshrl.u32 %v940_v55, 7  ;;  %s5455_s26 = smov 96   ;;  %s5456_s23 = smov 32  }
  0x9f   : > { %866 = vadd.xlane.f32.xlu0 %v862_v2  ;;  %4803 = vmatprep.subr.bf16.mxu1 %v5451_v6  ;;  %v5084_v29 = vld [vmem:[%s5733_s10 + $0x78] ss:$12 sps:$4 sm:$0xff]   ;;  %v5086_v31 = vld [vmem:[%s5733_s10 + $0x94] ss:$12 sps:$4 sm:$0xff]   ;;  %v5088_v33 = vld [vmem:[%s5733_s10 + $0x90] ss:$12 sps:$4 sm:$0xff]  }
  0xa0   : > { %1087 = vmatprep.subr.bf16.mxu0 %v5070_v19  ;;  %4815 = vmatprep.mubr.msk.bf16.mxu1 %vm5453_vm0, %v5451_v6  ;;  %v5089_v34 = vld [vmem:[%s5733_s10 + $0x98] ss:$12 sps:$4 sm:$0xff]   ;;  %v5092_v36 = vld [vmem:[%s5733_s10 + $0xa8] ss:$12 sps:$4 sm:$0xff]   ;;  %v5093_v37 = vld [vmem:[%s5733_s10 + $0xb0] ss:$12 sps:$4 sm:$0xff]  }
  0xa1   : > { %v5090_v35 = vld [vmem:[%s5733_s10 + $0xac] ss:$12 sps:$4 sm:$0xff]   ;;  %v4536_v46 = vld [vmem:[%s6539_s25] ss:$0 sm:$0xff]  ;;  %v5865_v57 = vsub.s32 0, %v5862_v56  ;;  %v5868_v58 = vsub.s32 1, %v5862_v56 }
  0xa2   : > { %1088 = vmatpush1.bf16.msra.mxu0 %v5072_v20  ;;  %4804 = vmatpush3.bf16.msra.mxu1 %v5073_v21  ;;  %v4537_v50 = vld [vmem:[%s6540_s18] ss:$0 sm:$0xff]  ;;  %v950_v60 = vsub.s32 2, %v5862_v56  ;;  %v5458_v17 = vmov 1934713408   ;;  %vm1615_vm1 = vcmask 261120  }
  0xa3   : > { %868 = vadd.xlane.f32.xlu0 %v863_v3  ;;  %4805 = vmatprep.subr.bf16.mxu1 %v5451_v6  ;;  %v938_v59 = vld [vmem:[%s5772_s11] sm:$0x7]  ;;  %s5454_s11 = smov 64   ;;  %v1213_v18 = vunpack.c.l.s4 %v5458_v17  ;;  %s6541_s5 = sld [smem:[#allocation21_spill]]  ;;  %vm1800_vm2 = vcmask 64512   ;;  %vm1856_vm3 = vcmask 1043456  }
  0xa4   : > { %1089 = vmatprep.subr.bf16.mxu0 %v5074_v22  ;;  %v943_v61 = vrot.slane %v938_v59, %v5865_v57  ;;  %v947_v62 = vrot.slane %v938_v59, %v5868_v58  ;;  %v5878_v1 = vrot.slane %v938_v59, %v950_v60  ;;  %vm2187_vm4 = vcmask 523264   ;;  %p4678_p7 = scmp.ne.s32.totalorder %s5432_s30, 1 }
  0xa5   : > { %v1214_v21 = vunpack.c.0.s8 %v1213_v18  ;;  %vm2189_vm5 = vcmask 785408   ;;  %vm4120_vm6 = vcmask (!%p4678_p7), 1041409   ;;  %vm4123_vm7 = vcmask (!%p4678_p7), 1041408   ;;  %s6546_s24 = sld [smem:[#allocation31_spill]] (!%p4678_p7) }
  0xa6   : > { %1090 = vmatpush1.bf16.msra.mxu0 %v5076_v23  ;;  %4806 = vmatpush3.bf16.msra.mxu1 %v5077_v24  ;;  %vm5460_vm8 = vmmov (!%p4678_p7), 0  }
  0xa7   : > { %4807 = vmatprep.subr.bf16.mxu1 %v5451_v6  ;;  %1091 = vmatprep.subr.bf16.mxu0 %v5078_v25 }
  0xaa   : > { %1092 = vmatpush1.bf16.msra.mxu0 %v5080_v26  ;;  %4808 = vmatpush3.bf16.msra.mxu1 %v5081_v27 }
  0xab   : > { %1093 = vmatprep.subr.bf16.mxu0 %v5082_v28  ;;  %4809 = vmatprep.subr.bf16.mxu1 %v5451_v6 }
  0xae   : > { %1094 = vmatpush1.bf16.msra.mxu0 %v5084_v29  ;;  %4810 = vmatpush3.bf16.msra.mxu1 %v5085_v30  ;;  %v5897_v29 = vsub.s32 %v1214_v21, %v5862_v56 }
  0xaf   : > { %1095 = vmatprep.subr.bf16.mxu0 %v5086_v31  ;;  %4811 = vmatprep.subr.bf16.mxu1 %v5451_v6 }
  0xb2   : > { %1096 = vmatpush1.bf16.msra.mxu0 %v5088_v33  ;;  %4812 = vmatpush3.bf16.msra.mxu1 %v5089_v34 }
  0xb3   : > { %1097 = vmatprep.subr.bf16.mxu0 %v5090_v35  ;;  %4813 = vmatprep.subr.bf16.mxu1 %v5451_v6 }
  0xb6   : > { %1098 = vmatpush1.bf16.msra.mxu0 %v5092_v36  ;;  %4814 = vmatpush3.bf16.msra.mxu1 %v5093_v37 }
  0xb7   : > { %4819 = vmatprep.subr.bf16.mxu1 %v5451_v6  ;;  %4843 = vmatprep.subr.bf16.mxu0 %v5451_v6 }
 0x12c   : > { %v867_v9 = vpop.xlane.xlu0 %866 }
 0x12d   : > { %v871_v10 = vmul.f32 0.0078125, %v867_v9 }
 0x12f   : > { %v5807_v11 = vsub.f32 %v862_v2, %v871_v10 }
 0x130   : > { %v869_v12 = vpop.xlane.xlu0 %868 }
 0x131   : > { %v872_v13 = vmul.f32 0.0078125, %v869_v12  ;;  %v875_v14 = vmul.f32 %v5807_v11, %v5807_v11 }
 0x133   : > { %v5811_v15 = vsub.f32 %v863_v3, %v872_v13  ;;  %877 = vadd.xlane.f32.xlu1 %v875_v14 }
 0x135   : > { %v876_v16 = vmul.f32 %v5811_v15, %v5811_v15 }
 0x137   : > { %879 = vadd.xlane.f32.xlu1 %v876_v16 }
 0x1c0   : > { %v878_v38 = vpop.xlane.xlu1 %877 }
 0x1c1   : > { %v881_v39 = vmul.f32 0.0078125, %v878_v38 }
 0x1c3   : > { %v883_v40 = vadd.f32 1e-05, %v881_v39 }
 0x1c4   : > { %v880_v41 = vpop.xlane.xlu1 %879 }
 0x1c5   : > { %5182 = vrsqrt.f32 %v883_v40  ;;  %v882_v42 = vmul.f32 0.0078125, %v880_v41 }
 0x1c7   : > { %v884_v43 = vadd.f32 1e-05, %v882_v42 }
 0x1c9   : > { %5184 = vrsqrt.f32 %v884_v43 }
 0x1cf   : > { %v5183_v44 = vpop.eup %5182 }
 0x1d0   : > { %v887_v45 = vmul.f32 %v5183_v44, %v5807_v11 }
 0x1d2   : > { %v895_v49 = vmul.f32 %v4536_v46, %v887_v45 }
 0x1d3   : > { %v5185_v47 = vpop.eup %5184 }
 0x1d4   : > { %v888_v48 = vmul.f32 %v5185_v47, %v5811_v15  ;;  %v903_v52 = vadd.f32 %v4537_v50, %v895_v49  ;;  %v5457_v15 = vmov 1983009808  }
 0x1d5   : > { %v1181_v16 = vunpack.c.l.s4 %v5457_v15 }
 0x1d6   : > { %v896_v51 = vmul.f32 %v4536_v46, %v888_v48 }
 0x1d7   : > { %v1182_v19 = vunpack.c.0.s8 %v1181_v16 }
 0x1d8   : > { %v904_v53 = vadd.f32 %v4537_v50, %v896_v51 }
 0x1d9   : > { %v5894_v22 = vsub.s32 %v1182_v19, %v5862_v56 }
 0x1da   : > { %v905_v54 = vpack.c.bf16 %v904_v53, %v903_v52 }
 0x1dc   : > { %1116 = vmatmul.mubr.bf16.vlgmr.msra.gmra.mrb[0].mxu0 %v905_v54  ;;  %4816 = vmatmul.mubr.bf16.vlgmr.msra.gmra.mrb[0].mxu1 %v905_v54 }
 0x1dd   : > { %4821 = vmatprep.mubr.msk.bf16.mxu1 %vm5453_vm0, %v5451_v6  ;;  %4845 = vmatprep.mubr.msk.bf16.mxu0 %vm5453_vm0, %v5451_v6 }
 0x2af   : > { %v1117_v63 = vpop.f32.mrb[0].mxu0  ;;  %v5874_v0 = vpop.f32.mrb[0].mxu1 }
 0x2b0   : > { %v1119_v2 = vpop.f32.mrb[1].mxu0  ;;  %v4817_v3 = vpop.f32.mrb[1].mxu1  ;;  %v1118_v4 = vadd.f32 %v1117_v63, %v943_v61 }
 0x2b1   : > { %v1120_v5 = vadd.f32 %v1119_v2, %v947_v62  ;;  %v1121_v7 = vpop.f32.mrb[2].mxu0  ;;  %v1163_v8 = vpop.f32.mrb[2].mxu1 }
 0x2b2   : > { %v5880_v9 = vadd.f32 %v1121_v7, %v943_v61  ;;  %v5883_v10 = vadd.f32 %v1163_v8, %v5878_v1  ;;  %v1123_v11 = vpop.f32.mrb[3].mxu0  ;;  %v4818_v12 = vpop.f32.mrb[3].mxu1  ;;  %v1167_v14 = vmul.f32 0.17677669, %v1118_v4 }
 0x2b3   : > { %v5885_v13 = vadd.f32 %v1123_v11, %v947_v62  ;;  %1318 = vrot.lane.b32.xlu1 %v1120_v5, %s5454_s11  ;;  %1315 = vrot.lane.b32.xlu0 %v1120_v5, %s5455_s26 }
 0x2b7   : > { %1321 = vrot.lane.b32.xlu1 %v1120_v5, %s5456_s23  ;;  %1172 = vrot.lane.b32.xlu0 %v1167_v14, %s5454_s11 }
 0x2bb   : > { %1169 = vrot.lane.b32.xlu1 %v1167_v14, %s5455_s26 }
 0x2bf   : > { %1175 = vrot.lane.b32.xlu1 %v1167_v14, %s5456_s23 }
 0x325   : > { %v1319_v20 = vpop.permute.xlu1 %1318  ;;  %v1316_v25 = vpop.permute.xlu0 %1315 }
 0x326   : > { %v1324_v23 = vcombine.low %v1120_v5, %v1319_v20  ;;  %v1325_v24 = vcombine.high %v1120_v5, %v1319_v20 }
 0x328   : > { %v1332_v30 = vrot.slane %v1324_v23, %v5894_v22  ;;  %v1339_v31 = vrot.slane %v1325_v24, %v5894_v22 }
 0x329   : > { %v1322_v26 = vpop.permute.xlu1 %1321  ;;  %v1173_v40 = vpop.permute.xlu0 %1172 }
 0x32a   : > { %v1340_v27 = vcombine.low %v1316_v25, %v1322_v26  ;;  %v1341_v28 = vcombine.high %v1316_v25, %v1322_v26  ;;  %v1178_v45 = vcombine.low %v1167_v14, %v1173_v40  ;;  %v1179_v46 = vcombine.high %v1167_v14, %v1173_v40 }
 0x32c   : > { %v1348_v33 = vrot.slane %v1340_v27, %v5894_v22  ;;  %v1355_v34 = vrot.slane %v1341_v28, %v5894_v22  ;;  %v1186_v62 = vrot.slane %v1178_v45, %v5894_v22  ;;  %v1193_v63 = vrot.slane %v1179_v46, %v5894_v22 }
 0x32d   : > { %v1170_v35 = vpop.permute.xlu1 %1169 }
 0x32e   : > { %v1356_v36 = vcombine.low %v1332_v30, %v1348_v33  ;;  %v1357_v37 = vcombine.high %v1332_v30, %v1348_v33  ;;  %v1372_v38 = vcombine.low %v1339_v31, %v1355_v34  ;;  %v1373_v39 = vcombine.high %v1339_v31, %v1355_v34 }
 0x330   : > { %v1364_v41 = vrot.slane %v1356_v36, %v5897_v29  ;;  %v1371_v42 = vrot.slane %v1357_v37, %v5897_v29  ;;  %v1380_v43 = vrot.slane %v1372_v38, %v5897_v29  ;;  %v1387_v44 = vrot.slane %v1373_v39, %v5897_v29 }
 0x331   : > { %v1176_v47 = vpop.permute.xlu1 %1175 }
 0x332   : > { %v1392_v48 = vcombine.low %v1364_v41, %v1371_v42  ;;  %v4564_v49 = vcombine.high %v1364_v41, %v1371_v42  ;;  %v1408_v50 = vcombine.low %v1380_v43, %v1387_v44  ;;  %v4565_v51 = vcombine.high %v1380_v43, %v1387_v44 }
 0x333   : > { %v1194_v52 = vcombine.low %v1170_v35, %v1176_v47  ;;  %v1195_v53 = vcombine.high %v1170_v35, %v1176_v47 }
 0x334   : > { %v1399_v54 = vrot.slane %v1392_v48, %v5894_v22  ;;  %v1407_v55 = vrot.slane %v4564_v49, %v5894_v22  ;;  %v1415_v59 = vrot.slane %v1408_v50, %v5894_v22  ;;  %v1423_v61 = vrot.slane %v4565_v51, %v5894_v22 }
 0x335   : > { %v1202_v2 = vrot.slane %v1194_v52, %v5894_v22  ;;  %v1209_v3 = vrot.slane %v1195_v53, %v5894_v22 }
 0x336   : > { %v1424_v4 = vcombine.low %v1399_v54, %v1407_v55  ;;  %v1440_v5 = vcombine.low %v1415_v59, %v1423_v61  ;;  %v1425_v34 = vcombine.high %v1399_v54, %v1407_v55  ;;  %v1441_v38 = vcombine.high %v1415_v59, %v1423_v61 }
 0x337   : > { %v1210_v7 = vcombine.low %v1186_v62, %v1202_v2  ;;  %v1211_v8 = vcombine.high %v1186_v62, %v1202_v2  ;;  %v1226_v11 = vcombine.low %v1193_v63, %v1209_v3  ;;  %v1227_v12 = vcombine.high %v1193_v63, %v1209_v3 }
 0x338   : > { %v1432_v14 = vrot.slane %v1424_v4, %v5897_v29  ;;  %v1448_v15 = vrot.slane %v1440_v5, %v5897_v29  ;;  %v1439_v43 = vrot.slane %v1425_v34, %v5897_v29  ;;  %v1455_v44 = vrot.slane %v1441_v38, %v5897_v29  ;;  %v5954_v5 = vld [vmem:[%s6541_s5] sm:$0xff] }
 0x339   : > { %v1218_v16 = vrot.slane %v1210_v7, %v5897_v29  ;;  %v1225_v17 = vrot.slane %v1211_v8, %v5897_v29  ;;  %v1234_v18 = vrot.slane %v1226_v11, %v5897_v29  ;;  %v1241_v19 = vrot.slane %v1227_v12, %v5897_v29 }
 0x33a   : > { %v1456_v20 = vcombine.low %v1432_v14, %v1448_v15  ;;  %v1457_v37 = vcombine.high %v1432_v14, %v1448_v15  ;;  %v1458_v47 = vcombine.low %v1439_v43, %v1455_v44  ;;  %v1459_v59 = vcombine.high %v1439_v43, %v1455_v44 }
 0x33b   : > { %v1246_v21 = vcombine.low %v1218_v16, %v1225_v17  ;;  %v4562_v23 = vcombine.high %v1218_v16, %v1225_v17  ;;  %v1262_v24 = vcombine.low %v1234_v18, %v1241_v19  ;;  %v4563_v25 = vcombine.high %v1234_v18, %v1241_v19 }
 0x33c   : > { %v1610_v26 = vpack.c.bf16 %v1456_v20, %v1456_v20  ;;  %v1611_v42 = vpack.c.bf16 %v1457_v37, %v1457_v37  ;;  %v1612_v51 = vpack.c.bf16 %v1458_v47, %v1458_v47  ;;  %v1613_v62 = vpack.c.bf16 %v1459_v59, %v1459_v59 }
 0x33d   : > { %v1253_v27 = vrot.slane %v1246_v21, %v5894_v22  ;;  %v1261_v28 = vrot.slane %v4562_v23, %v5894_v22  ;;  %v1269_v30 = vrot.slane %v1262_v24, %v5894_v22  ;;  %v1277_v31 = vrot.slane %v4563_v25, %v5894_v22 }
 0x33e   : > { %v1620_v33 = vsel %vm1615_vm1, %v1610_v26, 0  ;;  %v1666_v46 = vsel %vm1615_vm1, %v1611_v42, 0  ;;  %v1712_v55 = vsel %vm1615_vm1, %v1612_v51, 0  ;;  %v1758_v2 = vsel %vm1615_vm1, %v1613_v62, 0 }
 0x33f   : > { %v1278_v35 = vcombine.low %v1253_v27, %v1261_v28  ;;  %v1294_v36 = vcombine.low %v1269_v30, %v1277_v31  ;;  %4820 = vmatpush3.bf16.xpose.msra.mxu1 %v1620_v33  ;;  %v1279_v48 = vcombine.high %v1253_v27, %v1261_v28  ;;  %v1295_v49 = vcombine.high %v1269_v30, %v1277_v31 }
 0x340   : > { %4825 = vmatprep.subr.bf16.mxu1 %v5451_v6 }
 0x341   : > { %v1286_v39 = vrot.slane %v1278_v35, %v5897_v29  ;;  %v1302_v40 = vrot.slane %v1294_v36, %v5897_v29  ;;  %v1293_v53 = vrot.slane %v1279_v48, %v5897_v29  ;;  %v1309_v54 = vrot.slane %v1295_v49, %v5897_v29 }
 0x342   : > { %v1161_v35 = vadd.f32 %v5874_v0, %v5878_v1  ;;  %v5976_v0 = vmul.f32 0.17677669, %v5880_v9 }
 0x343   : > { %v1310_v41 = vcombine.low %v1286_v39, %v1302_v40  ;;  %v1311_v50 = vcombine.high %v1286_v39, %v1302_v40  ;;  %v1312_v61 = vcombine.low %v1293_v53, %v1309_v54  ;;  %v1313_v3 = vcombine.high %v1293_v53, %v1309_v54 }
 0x345   : > { %v1606_v45 = vpack.c.bf16 %v1310_v41, %v1310_v41  ;;  %v1607_v52 = vpack.c.bf16 %v1311_v50, %v1311_v50  ;;  %v1608_v63 = vpack.c.bf16 %v1312_v61, %v1312_v61  ;;  %v1609_v4 = vpack.c.bf16 %v1313_v3, %v1313_v3 }
 0x347   : > { %4822 = vmatmul.mubr.msk.bf16.vlgmr.msra.gmra.mrb[4].mxu1 %vm1615_vm1, %v1606_v45 }
 0x348   : > { %4826 = vmatpush3.bf16.xpose.msra.mxu1 %v1666_v46  ;;  %4827 = vmatprep.mubr.msk.bf16.mxu1 %vm5453_vm0, %v5451_v6 }
 0x349   : > { %4831 = vmatprep.subr.bf16.mxu1 %v5451_v6 }
 0x34f   : > { %4828 = vmatmul.mubr.msk.bf16.vlgmr.msra.gmra.mrb[8].mxu1 %vm1615_vm1, %v1607_v52 }
 0x350   : > { %4832 = vmatpush3.bf16.xpose.msra.mxu1 %v1712_v55  ;;  %4833 = vmatprep.mubr.msk.bf16.mxu1 %vm5453_vm0, %v5451_v6 }
 0x351   : > { %4837 = vmatprep.subr.bf16.mxu1 %v5451_v6 }
 0x357   : > { %4834 = vmatmul.mubr.msk.bf16.vlgmr.msra.gmra.mrb[12].mxu1 %vm1615_vm1, %v1608_v63 }
 0x358   : > { %4838 = vmatpush3.bf16.xpose.msra.mxu1 %v1758_v2  ;;  %4839 = vmatprep.mubr.msk.bf16.mxu1 %vm5453_vm0, %v5451_v6 }
 0x359   : > { %4849 = vmatprep.subr.bf16.mxu1 %v5451_v6 }
 0x35f   : > { %4840 = vmatmul.mubr.msk.bf16.vlgmr.msra.gmra.mrb[16].mxu1 %vm1615_vm1, %v1609_v4 }
 0x360   : > { %4851 = vmatprep.mubr.msk.bf16.mxu1 %vm5453_vm0, %v5451_v6 }
 0x41a   : > { %v1656_v7 = vpop.f32.mrb[4].mxu1 }
 0x41b   : > { %v1657_v8 = vadd.f32 %v1656_v7, %v5954_v5  ;;  %v4823_v11 = vpop.f32.mrb[5].mxu1 }
 0x41c   : > { %v1659_v12 = vpop.f32.mrb[6].mxu1 }
 0x41d   : > { %v4824_v14 = vpop.f32.mrb[7].mxu1  ;;  %v1801_v15 = vsel %vm1800_vm2, %v1657_v8, -inf }
 0x41e   : > { %1802 = vmax.xlane.f32.xlu0 %v1801_v15 }
 0x422   : > { %v1702_v16 = vpop.f32.mrb[8].mxu1 }
 0x423   : > { %v1703_v17 = vadd.f32 %v1702_v16, %v5954_v5  ;;  %v4829_v18 = vpop.f32.mrb[9].mxu1 }
 0x424   : > { %v1705_v19 = vpop.f32.mrb[10].mxu1 }
 0x425   : > { %v4830_v20 = vpop.f32.mrb[11].mxu1  ;;  %v1804_v21 = vsel %vm1800_vm2, %v1703_v17, -inf }
 0x426   : > { %1805 = vmax.xlane.f32.xlu1 %v1804_v21 }
 0x42a   : > { %v1748_v23 = vpop.f32.mrb[12].mxu1 }
 0x42b   : > { %v1749_v24 = vadd.f32 %v1748_v23, %v5954_v5  ;;  %v4835_v25 = vpop.f32.mrb[13].mxu1 }
 0x42c   : > { %v1751_v26 = vpop.f32.mrb[14].mxu1 }
 0x42d   : > { %v4836_v27 = vpop.f32.mrb[15].mxu1  ;;  %v1807_v28 = vsel %vm1800_vm2, %v1749_v24, -inf }
 0x42e   : > { %1808 = vmax.xlane.f32.xlu0 %v1807_v28 }
 0x432   : > { %v1794_v30 = vpop.f32.mrb[16].mxu1 }
 0x433   : > { %v1795_v31 = vadd.f32 %v1794_v30, %v5954_v5  ;;  %v4841_v33 = vpop.f32.mrb[17].mxu1 }
 0x434   : > { %v1797_v34 = vpop.f32.mrb[18].mxu1 }
 0x435   : > { %v4842_v36 = vpop.f32.mrb[19].mxu1  ;;  %v1810_v37 = vsel %vm1800_vm2, %v1795_v31, -inf }
 0x436   : > { %1811 = vmax.xlane.f32.xlu0 %v1810_v37 }
 0x437   : > { %1464 = vrot.lane.b32.xlu1 %v1161_v35, %s5454_s11 }
 0x43b   : > { %1467 = vrot.lane.b32.xlu1 %v1161_v35, %s5456_s23 }
 0x43f   : > { %2342 = vrot.lane.b32.xlu1 %v5885_v13, %s5454_s11 }
 0x443   : > { %2345 = vrot.lane.b32.xlu1 %v5885_v13, %s5456_s23 }
 0x44c   : > { %1461 = vrot.lane.b32.xlu0 %v1161_v35, %s5455_s26 }
 0x450   : > { %2339 = vrot.lane.b32.xlu0 %v5885_v13, %s5455_s26 }
 0x454   : > { %2193 = vrot.lane.b32.xlu0 %v5976_v0, %s5455_s26 }
 0x4ab   : > { %v1803_v1 = vpop.xlane.xlu0 %1802 }
 0x4ac   : > { %v1813_v38 = vsub.f32 %v1657_v8, %v1803_v1 }
 0x4ae   : > { %v1817_v39 = vmul.f32 1.442695, %v1813_v38 }
 0x4b0   : > { %5186 = vpow2.f32 %v1817_v39 }
 0x4b3   : > { %v1806_v40 = vpop.xlane.xlu1 %1805 }
 0x4b4   : > { %v1814_v41 = vsub.f32 %v1703_v17, %v1806_v40 }
 0x4b6   : > { %v1819_v42 = vmul.f32 1.442695, %v1814_v41 }
 0x4b7   : > { %v1465_v47 = vpop.permute.xlu1 %1464 }
 0x4b8   : > { %5188 = vpow2.f32 %v1819_v42  ;;  %v1470_v52 = vcombine.low %v1161_v35, %v1465_v47  ;;  %v1471_v53 = vcombine.high %v1161_v35, %v1465_v47 }
 0x4ba   : > { %v5980_v43 = vpop.eup %5186  ;;  %v1478_v2 = vrot.slane %v1470_v52, %v5894_v22  ;;  %v1485_v3 = vrot.slane %v1471_v53, %v5894_v22 }
 0x4bb   : > { %v1809_v44 = vpop.xlane.xlu0 %1808  ;;  %v1825_v45 = vsel %vm1800_vm2, %v5980_v43, 0.0  ;;  %v1468_v55 = vpop.permute.xlu1 %1467 }
 0x4bc   : > { %v1815_v46 = vsub.f32 %v1749_v24, %v1809_v44  ;;  %1826 = vadd.xlane.f32.xlu0 %v1825_v45 }
 0x4be   : > { %v1821_v9 = vmul.f32 1.442695, %v1815_v46 }
 0x4c0   : > { %5190 = vpow2.f32 %v1821_v9 }
 0x4c2   : > { %v5984_v48 = vpop.eup %5188 }
 0x4c3   : > { %v1812_v49 = vpop.xlane.xlu0 %1811  ;;  %v1828_v50 = vsel %vm1800_vm2, %v5984_v48, 0.0 }
 0x4c4   : > { %v1816_v51 = vsub.f32 %v1795_v31, %v1812_v49  ;;  %1829 = vadd.xlane.f32.xlu1 %v1828_v50  ;;  %v2343_v49 = vpop.permute.xlu1 %2342 }
 0x4c6   : > { %v1823_v54 = vmul.f32 1.442695, %v1816_v51 }
 0x4c7   : > { %v1462_v59 = vpop.permute.xlu0 %1461 }
 0x4c8   : > { %5192 = vpow2.f32 %v1823_v54  ;;  %v1486_v61 = vcombine.low %v1462_v59, %v1468_v55  ;;  %v1487_v62 = vcombine.high %v1462_v59, %v1468_v55  ;;  %v2346_v51 = vpop.permute.xlu1 %2345  ;;  %v2348_v54 = vcombine.low %v5885_v13, %v2343_v49 }
 0x4c9   : > { %v2349_v55 = vcombine.high %v5885_v13, %v2343_v49 }
 0x4ca   : > { %v5988_v63 = vpop.eup %5190  ;;  %v1494_v4 = vrot.slane %v1486_v61, %v5894_v22  ;;  %v1501_v7 = vrot.slane %v1487_v62, %v5894_v22 }
 0x4cb   : > { %v1831_v8 = vsel %vm1800_vm2, %v5988_v63, 0.0  ;;  %v2340_v50 = vpop.permute.xlu0 %2339 }
 0x4cc   : > { %v1502_v11 = vcombine.low %v1478_v2, %v1494_v4  ;;  %v1503_v12 = vcombine.high %v1478_v2, %v1494_v4  ;;  %v1518_v14 = vcombine.low %v1485_v3, %v1501_v7  ;;  %v1519_v15 = vcombine.high %v1485_v3, %v1501_v7  ;;  %1832 = vadd.xlane.f32.xlu1 %v1831_v8 }
 0x4cd   : > { %v2364_v52 = vcombine.low %v2340_v50, %v2346_v51  ;;  %v2365_v53 = vcombine.high %v2340_v50, %v2346_v51  ;;  %v2356_v2 = vrot.slane %v2348_v54, %v5894_v22  ;;  %v2363_v3 = vrot.slane %v2349_v55, %v5894_v22 }
 0x4ce   : > { %v1510_v16 = vrot.slane %v1502_v11, %v5897_v29  ;;  %v1517_v17 = vrot.slane %v1503_v12, %v5897_v29  ;;  %v1526_v18 = vrot.slane %v1518_v14, %v5897_v29  ;;  %v1533_v19 = vrot.slane %v1519_v15, %v5897_v29 }
 0x4cf   : > { %v2372_v59 = vrot.slane %v2364_v52, %v5894_v22  ;;  %v2379_v61 = vrot.slane %v2365_v53, %v5894_v22  ;;  %v6026_v62 = vpop.permute.xlu0 %2193 }
 0x4d0   : > { %v1538_v20 = vcombine.low %v1510_v16, %v1517_v17  ;;  %v4566_v21 = vcombine.high %v1510_v16, %v1517_v17  ;;  %v1554_v23 = vcombine.low %v1526_v18, %v1533_v19  ;;  %v4567_v24 = vcombine.high %v1526_v18, %v1533_v19 }
 0x4d1   : > { %v2380_v4 = vcombine.low %v2356_v2, %v2372_v59  ;;  %v2381_v7 = vcombine.high %v2356_v2, %v2372_v59  ;;  %v2396_v8 = vcombine.low %v2363_v3, %v2379_v61  ;;  %v2397_v11 = vcombine.high %v2363_v3, %v2379_v61 }
 0x4d2   : > { %v6000_v25 = vpop.eup %5192  ;;  %v1545_v26 = vrot.slane %v1538_v20, %v5894_v22  ;;  %v1553_v27 = vrot.slane %v4566_v21, %v5894_v22  ;;  %v1561_v28 = vrot.slane %v1554_v23, %v5894_v22  ;;  %v1569_v30 = vrot.slane %v4567_v24, %v5894_v22 }
 0x4d3   : > { %v1834_v31 = vsel %vm1800_vm2, %v6000_v25, 0.0  ;;  %v2388_v14 = vrot.slane %v2380_v4, %v5897_v29  ;;  %v2395_v13 = vrot.slane %v2381_v7, %v5897_v29  ;;  %v2404_v15 = vrot.slane %v2396_v8, %v5897_v29 }
 0x4d4   : > { %v1570_v33 = vcombine.low %v1545_v26, %v1553_v27  ;;  %v1586_v34 = vcombine.low %v1561_v28, %v1569_v30  ;;  %v1571_v35 = vcombine.high %v1545_v26, %v1553_v27  ;;  %1835 = vadd.xlane.f32.xlu0 %v1834_v31  ;;  %v1587_v38 = vcombine.high %v1561_v28, %v1569_v30 }
 0x4d5   : > { %v2411_v16 = vrot.slane %v2397_v11, %v5897_v29  ;;  %v2416_v17 = vcombine.low %v2388_v14, %v2395_v13  ;;  %v4580_v18 = vcombine.high %v2388_v14, %v2395_v13 }
 0x4d6   : > { %v1578_v36 = vrot.slane %v1570_v33, %v5897_v29  ;;  %v1594_v37 = vrot.slane %v1586_v34, %v5897_v29  ;;  %v1585_v1 = vrot.slane %v1571_v35, %v5897_v29  ;;  %v1601_v41 = vrot.slane %v1587_v38, %v5897_v29 }
 0x4d7   : > { %v2432_v19 = vcombine.low %v2404_v15, %v2411_v16  ;;  %v4581_v20 = vcombine.high %v2404_v15, %v2411_v16  ;;  %v6035_v24 = vrot.slane %v2416_v17, %v5894_v22  ;;  %v6038_v26 = vrot.slane %v4580_v18, %v5894_v22 }
 0x4d8   : > { %v1602_v39 = vcombine.low %v1578_v36, %v1594_v37  ;;  %v1603_v40 = vcombine.high %v1578_v36, %v1594_v37  ;;  %v1604_v45 = vcombine.low %v1585_v1, %v1601_v41  ;;  %v6012_v46 = vcombine.high %v1585_v1, %v1601_v41 }
 0x4d9   : > { %v6041_v27 = vrot.slane %v2432_v19, %v5894_v22  ;;  %v2447_v28 = vrot.slane %v4581_v20, %v5894_v22  ;;  %v2448_v34 = vcombine.low %v6035_v24, %v6038_v26 }
 0x4da   : > { %v1849_v42 = vpack.c.bf16 %v1602_v39, %v1602_v39  ;;  %v1850_v44 = vpack.c.bf16 %v1603_v40, %v1603_v40  ;;  %v1851_v31 = vpack.c.bf16 %v1604_v45, %v1604_v45  ;;  %v1852_v40 = vpack.c.bf16 %v6012_v46, %v6012_v46 }
 0x4db   : > { %v2464_v35 = vcombine.low %v6041_v27, %v2447_v28  ;;  %v2456_v1 = vrot.slane %v2448_v34, %v5897_v29  ;;  %v2465_v3 = vcombine.high %v6041_v27, %v2447_v28 }
 0x4dc   : > { %v1858_v9 = vsel %vm1856_vm3, %v1849_v42, 0  ;;  %v1904_v47 = vsel %vm1856_vm3, %v1850_v44, 0  ;;  %v1950_v37 = vsel %vm1856_vm3, %v1851_v31, 0  ;;  %v1996_v44 = vsel %vm1856_vm3, %v1852_v40, 0 }
 0x4dd   : > { %2196 = vrot.lane.b32.xlu1 %v5976_v0, %s5454_s11  ;;  %4844 = vmatpush3.bf16.msra.mxu0 %v1858_v9  ;;  %v2472_v38 = vrot.slane %v2464_v35, %v5897_v29  ;;  %v2479_v20 = vrot.slane %v2465_v3, %v5897_v29 }
 0x4de   : > { %4850 = vmatpush3.bf16.msra.mxu1 %v1904_v47  ;;  %4855 = vmatprep.subr.bf16.mxu0 %v5451_v6 }
 0x4df   : > { %4861 = vmatprep.subr.bf16.mxu1 %v5451_v6  ;;  %v2480_v42 = vcombine.low %v2456_v1, %v2472_v38 }
 0x4ea   : > { %2199 = vrot.lane.b32.xlu0 %v5976_v0, %s5456_s23 }
 0x549   : > { %v1827_v12 = vpop.xlane.xlu0 %1826 }
 0x54a   : > { %5194 = vrcp.f32 %v1827_v12 }
 0x551   : > { %v1830_v21 = vpop.xlane.xlu1 %1829 }
 0x552   : > { %5196 = vrcp.f32 %v1830_v21 }
 0x554   : > { %v5195_v23 = vpop.eup %5194 }
 0x555   : > { %v1841_v30 = vmul.f32 %v5195_v23, %v5980_v43 }
 0x557   : > { %v1845_v33 = vpack.c.bf16 %v1841_v30, %v1841_v30 }
 0x559   : > { %v1833_v36 = vpop.xlane.xlu1 %1832  ;;  %4846 = vmatmul.mubr.msk.bf16.vlgmr.msra.gmra.mrb[4].mxu0 %vm1800_vm2, %v1845_v33 }
 0x55a   : > { %5198 = vrcp.f32 %v1833_v36  ;;  %4856 = vmatpush3.bf16.msra.mxu0 %v1950_v37  ;;  %4857 = vmatprep.mubr.msk.bf16.mxu0 %vm5453_vm0, %v5451_v6 }
 0x55b   : > { %4867 = vmatprep.subr.bf16.mxu0 %v5451_v6 }
 0x55c   : > { %v5197_v43 = vpop.eup %5196 }
 0x55d   : > { %v1842_v39 = vmul.f32 %v5197_v43, %v5984_v48  ;;  %v2197_v45 = vpop.permute.xlu1 %2196  ;;  %v2634_v48 = vpack.c.bf16 %v2480_v42, %v2480_v42 }
 0x55e   : > { %v2202_v46 = vcombine.low %v5976_v0, %v2197_v45  ;;  %v2203_v50 = vcombine.high %v5976_v0, %v2197_v45  ;;  %v2481_v0 = vcombine.high %v2456_v1, %v2472_v38 }
 0x55f   : > { %v1846_v41 = vpack.c.bf16 %v1842_v39, %v1842_v39  ;;  %v2643_v55 = vsel %vm1615_vm1, %v2634_v48, 0 }
 0x560   : > { %v2210_v59 = vrot.slane %v2202_v46, %v5894_v22  ;;  %v2217_v61 = vrot.slane %v2203_v50, %v5894_v22  ;;  %v2635_v18 = vpack.c.bf16 %v2481_v0, %v2481_v0 }
 0x561   : > { %4852 = vmatmul.mubr.msk.bf16.vlgmr.msra.gmra.mrb[20].mxu1 %vm1800_vm2, %v1846_v41  ;;  %v1836_v9 = vpop.xlane.xlu0 %1835 }
 0x562   : > { %4862 = vmatpush3.bf16.msra.mxu1 %v1996_v44  ;;  %4863 = vmatprep.mubr.msk.bf16.mxu1 %vm5453_vm0, %v5451_v6  ;;  %5200 = vrcp.f32 %v1836_v9 }
 0x563   : > { %4873 = vmatprep.subr.bf16.mxu1 %v5451_v6 }
 0x564   : > { %v5199_v47 = vpop.eup %5198 }
 0x565   : > { %v1843_v49 = vmul.f32 %v5199_v47, %v5988_v63  ;;  %v2200_v51 = vpop.permute.xlu0 %2199 }
 0x566   : > { %v2218_v52 = vcombine.low %v6026_v62, %v2200_v51  ;;  %v2219_v53 = vcombine.high %v6026_v62, %v2200_v51  ;;  %v2449_v62 = vcombine.high %v6035_v24, %v6038_v26 }
 0x567   : > { %v1847_v54 = vpack.c.bf16 %v1843_v49, %v1843_v49 }
 0x568   : > { %v2226_v2 = vrot.slane %v2218_v52, %v5894_v22  ;;  %v2233_v63 = vrot.slane %v2219_v53, %v5894_v22  ;;  %v2463_v19 = vrot.slane %v2449_v62, %v5897_v29 }
 0x569   : > { %4858 = vmatmul.mubr.msk.bf16.vlgmr.msra.gmra.mrb[8].mxu0 %vm1800_vm2, %v1847_v54 }
 0x56a   : > { %4868 = vmatpush3.bf16.xpose.msra.mxu0 %v2643_v55  ;;  %4869 = vmatprep.mubr.msk.bf16.mxu0 %vm5453_vm0, %v5451_v6  ;;  %v2234_v4 = vcombine.low %v2210_v59, %v2226_v2  ;;  %v2235_v7 = vcombine.high %v2210_v59, %v2226_v2  ;;  %v2250_v8 = vcombine.low %v2217_v61, %v2233_v63 }
 0x56b   : > { %v2251_v11 = vcombine.high %v2217_v61, %v2233_v63  ;;  %4879 = vmatprep.subr.bf16.mxu0 %v5451_v6  ;;  %v2482_v36 = vcombine.low %v2463_v19, %v2479_v20  ;;  %v2483_v37 = vcombine.high %v2463_v19, %v2479_v20 }
 0x56c   : > { %v5201_v12 = vpop.eup %5200  ;;  %v2242_v14 = vrot.slane %v2234_v4, %v5897_v29  ;;  %v2249_v13 = vrot.slane %v2235_v7, %v5897_v29  ;;  %v2258_v15 = vrot.slane %v2250_v8, %v5897_v29 }
 0x56d   : > { %v2265_v16 = vrot.slane %v2251_v11, %v5897_v29  ;;  %v1844_v17 = vmul.f32 %v5201_v12, %v6000_v25  ;;  %v2689_v25 = vsel %vm1615_vm1, %v2635_v18, 0  ;;  %v2636_v42 = vpack.c.bf16 %v2482_v36, %v2482_v36 }
 0x56e   : > { %v2270_v21 = vcombine.low %v2242_v14, %v2249_v13  ;;  %v4578_v23 = vcombine.high %v2242_v14, %v2249_v13  ;;  %v2637_v44 = vpack.c.bf16 %v2483_v37, %v2483_v37 }
 0x56f   : > { %v2286_v24 = vcombine.low %v2258_v15, %v2265_v16  ;;  %v4579_v26 = vcombine.high %v2258_v15, %v2265_v16  ;;  %v1848_v27 = vpack.c.bf16 %v1844_v17, %v1844_v17  ;;  %v2735_v49 = vsel %vm1615_vm1, %v2636_v42, 0 }
 0x570   : > { %v2277_v28 = vrot.slane %v2270_v21, %v5894_v22  ;;  %v2285_v30 = vrot.slane %v4578_v23, %v5894_v22  ;;  %v2781_v46 = vsel %vm1615_vm1, %v2637_v44, 0 }
 0x571   : > { %v2293_v31 = vrot.slane %v2286_v24, %v5894_v22  ;;  %v2301_v33 = vrot.slane %v4579_v26, %v5894_v22  ;;  %4864 = vmatmul.mubr.msk.bf16.vlgmr.msra.gmra.mrb[24].mxu1 %vm1800_vm2, %v1848_v27 }
 0x572   : > { %v2302_v34 = vcombine.low %v2277_v28, %v2285_v30  ;;  %4874 = vmatpush3.bf16.xpose.msra.mxu1 %v2689_v25  ;;  %4875 = vmatprep.mubr.msk.bf16.mxu1 %vm5453_vm0, %v5451_v6  ;;  %v2303_v43 = vcombine.high %v2277_v28, %v2285_v30 }
 0x573   : > { %v2318_v35 = vcombine.low %v2293_v31, %v2301_v33  ;;  %4885 = vmatprep.subr.bf16.mxu1 %v5451_v6  ;;  %v2319_v1 = vcombine.high %v2293_v31, %v2301_v33 }
 0x574   : > { %v2310_v38 = vrot.slane %v2302_v34, %v5897_v29  ;;  %v2317_v47 = vrot.slane %v2303_v43, %v5897_v29 }
 0x575   : > { %v2326_v39 = vrot.slane %v2318_v35, %v5897_v29  ;;  %v2333_v48 = vrot.slane %v2319_v1, %v5897_v29 }
 0x577   : > { %v2334_v40 = vcombine.low %v2310_v38, %v2326_v39  ;;  %v2335_v41 = vcombine.high %v2310_v38, %v2326_v39  ;;  %v2336_v50 = vcombine.low %v2317_v47, %v2333_v48  ;;  %v2337_v51 = vcombine.high %v2317_v47, %v2333_v48 }
 0x579   : > { %v2630_v45 = vpack.c.bf16 %v2334_v40, %v2334_v40  ;;  %v2631_v9 = vpack.c.bf16 %v2335_v41, %v2335_v41  ;;  %v2632_v52 = vpack.c.bf16 %v2336_v50, %v2336_v50  ;;  %v2633_v53 = vpack.c.bf16 %v2337_v51, %v2337_v51 }
 0x57b   : > { %4870 = vmatmul.mubr.msk.bf16.vlgmr.msra.gmra.mrb[12].mxu0 %vm1615_vm1, %v2630_v45  ;;  %4876 = vmatmul.mubr.msk.bf16.vlgmr.msra.gmra.mrb[28].mxu1 %vm1615_vm1, %v2631_v9 }
 0x57c   : > { %4880 = vmatpush3.bf16.xpose.msra.mxu0 %v2735_v49  ;;  %4886 = vmatpush3.bf16.xpose.msra.mxu1 %v2781_v46 }
 0x57d   : > { %4881 = vmatprep.mubr.msk.bf16.mxu0 %vm5453_vm0, %v5451_v6  ;;  %4887 = vmatprep.mubr.msk.bf16.mxu1 %vm5453_vm0, %v5451_v6 }
 0x57e   : > { %4891 = vmatprep.subr.bf16.mxu0 %v5451_v6  ;;  %4897 = vmatprep.subr.bf16.mxu1 %v5451_v6 }
 0x583   : > { %4882 = vmatmul.mubr.msk.bf16.vlgmr.msra.gmra.mrb[16].mxu0 %vm1615_vm1, %v2632_v52  ;;  %4888 = vmatmul.mubr.msk.bf16.vlgmr.msra.gmra.mrb[32].mxu1 %vm1615_vm1, %v2633_v53 }
 0x584   : > { %4893 = vmatprep.mubr.msk.bf16.mxu0 %vm5453_vm0, %v5451_v6  ;;  %4899 = vmatprep.mubr.msk.bf16.mxu1 %vm5453_vm0, %v5451_v6 }
 0x62c   : > { %v1894_v54 = vpop.f32.mrb[4].mxu0 }
 0x62d   : > { %v4847_v55 = vpop.f32.mrb[5].mxu0 }
 0x62e   : > { %v1897_v59 = vpop.f32.mrb[6].mxu0 }
 0x62f   : > { %v4848_v61 = vpop.f32.mrb[7].mxu0 }
 0x634   : > { %v1940_v2 = vpop.f32.mrb[20].mxu1 }
 0x635   : > { %v4853_v63 = vpop.f32.mrb[21].mxu1 }
 0x636   : > { %v1943_v0 = vpop.f32.mrb[22].mxu1 }
 0x637   : > { %v4854_v62 = vpop.f32.mrb[23].mxu1 }
 0x63c   : > { %v1986_v3 = vpop.f32.mrb[8].mxu0 }
 0x63d   : > { %v2038_v4 = vcombine.low %v1894_v54, %v1986_v3  ;;  %v2039_v7 = vcombine.high %v1894_v54, %v1986_v3  ;;  %v4859_v8 = vpop.f32.mrb[9].mxu0 }
 0x63e   : > { %v1989_v11 = vpop.f32.mrb[10].mxu0 }
 0x63f   : > { %v4860_v12 = vpop.f32.mrb[11].mxu0  ;;  %v2046_v18 = vrot.slane %v2038_v4, %v5894_v22  ;;  %v2053_v19 = vrot.slane %v2039_v7, %v5894_v22 }
 0x644   : > { %v2032_v14 = vpop.f32.mrb[24].mxu1 }
 0x645   : > { %v2054_v13 = vcombine.low %v1940_v2, %v2032_v14  ;;  %v2055_v15 = vcombine.high %v1940_v2, %v2032_v14  ;;  %v4865_v16 = vpop.f32.mrb[25].mxu1 }
 0x646   : > { %v2035_v17 = vpop.f32.mrb[26].mxu1 }
 0x647   : > { %v2062_v20 = vrot.slane %v2054_v13, %v5894_v22  ;;  %v2069_v21 = vrot.slane %v2055_v15, %v5894_v22  ;;  %v4866_v23 = vpop.f32.mrb[27].mxu1 }
 0x649   : > { %v2070_v24 = vcombine.low %v2046_v18, %v2062_v20  ;;  %v2071_v26 = vcombine.high %v2046_v18, %v2062_v20  ;;  %v2086_v27 = vcombine.low %v2053_v19, %v2069_v21  ;;  %v2087_v28 = vcombine.high %v2053_v19, %v2069_v21 }
 0x64b   : > { %v2078_v30 = vrot.slane %v2070_v24, %v5897_v29  ;;  %v2085_v31 = vrot.slane %v2071_v26, %v5897_v29  ;;  %v2094_v33 = vrot.slane %v2086_v27, %v5897_v29  ;;  %v2101_v25 = vrot.slane %v2087_v28, %v5897_v29 }
 0x64d   : > { %v2106_v34 = vcombine.low %v2078_v30, %v2085_v31  ;;  %v4576_v35 = vcombine.high %v2078_v30, %v2085_v31  ;;  %v2122_v36 = vcombine.low %v2094_v33, %v2101_v25  ;;  %v4577_v37 = vcombine.high %v2094_v33, %v2101_v25 }
 0x64e   : > { %v2679_v43 = vpop.f32.mrb[12].mxu0  ;;  %v2725_v1 = vpop.f32.mrb[28].mxu1 }
 0x64f   : > { %v2680_v38 = vadd.f32 %v2679_v43, %v5954_v5  ;;  %v2726_v39 = vadd.f32 %v2725_v1, %v5954_v5  ;;  %v4871_v40 = vpop.f32.mrb[13].mxu0  ;;  %v4877_v41 = vpop.f32.mrb[29].mxu1  ;;  %v2113_v42 = vrot.slane %v2106_v34, %v5894_v22  ;;  %v2121_v44 = vrot.slane %v4576_v35, %v5894_v22 }
 0x650   : > { %v2129_v45 = vrot.slane %v2122_v36, %v5894_v22  ;;  %v2137_v9 = vrot.slane %v4577_v37, %v5894_v22  ;;  %v2682_v47 = vpop.f32.mrb[14].mxu0  ;;  %v2728_v48 = vpop.f32.mrb[30].mxu1 }
 0x651   : > { %v4872_v49 = vpop.f32.mrb[15].mxu0  ;;  %v4878_v46 = vpop.f32.mrb[31].mxu1  ;;  %v2823_v50 = vsel %vm1800_vm2, %v2680_v38, -inf  ;;  %v2826_v51 = vsel %vm1800_vm2, %v2726_v39, -inf  ;;  %v2139_v52 = vcombine.high %v2113_v42, %v2121_v44  ;;  %v2138_v54 = vcombine.low %v2113_v42, %v2121_v44 }
 0x652   : > { %2824 = vmax.xlane.f32.xlu1 %v2823_v50  ;;  %2827 = vmax.xlane.f32.xlu0 %v2826_v51  ;;  %v2155_v53 = vcombine.high %v2129_v45, %v2137_v9  ;;  %v2154_v55 = vcombine.low %v2129_v45, %v2137_v9 }
 0x653   : > { %v6133_v59 = vrot.slane %v2139_v52, %v5897_v29  ;;  %v6139_v2 = vrot.slane %v2138_v54, %v5897_v29 }
 0x654   : > { %v6136_v61 = vrot.slane %v2155_v53, %v5897_v29  ;;  %v6142_v63 = vrot.slane %v2154_v55, %v5897_v29 }
 0x656   : > { %v2771_v0 = vpop.f32.mrb[16].mxu0  ;;  %v2817_v62 = vpop.f32.mrb[32].mxu1  ;;  %v2172_v3 = vcombine.low %v6133_v59, %v6136_v61  ;;  %v2173_v4 = vcombine.high %v6133_v59, %v6136_v61  ;;  %v2170_v12 = vcombine.low %v6139_v2, %v6142_v63  ;;  %v2171_v14 = vcombine.high %v6139_v2, %v6142_v63  ;;  %v4594_v2 = vld [vmem:[%s6542_s13] ss:$0 sm:$0xff] }
 0x657   : > { %v2772_v7 = vadd.f32 %v2771_v0, %v5954_v5  ;;  %v4883_v8 = vpop.f32.mrb[17].mxu0  ;;  %v4889_v11 = vpop.f32.mrb[33].mxu1  ;;  %v2818_v16 = vadd.f32 %v2817_v62, %v5954_v5 }
 0x658   : > { %v2774_v13 = vpop.f32.mrb[18].mxu0  ;;  %v2820_v15 = vpop.f32.mrb[34].mxu1 }
 0x659   : > { %v4884_v17 = vpop.f32.mrb[19].mxu0  ;;  %v4890_v18 = vpop.f32.mrb[35].mxu1  ;;  %v2829_v19 = vsel %vm1800_vm2, %v2772_v7, -inf  ;;  %v2832_v20 = vsel %vm1800_vm2, %v2818_v16, -inf }
 0x65a   : > { %2830 = vmax.xlane.f32.xlu0 %v2829_v19 }
 0x65e   : > { %2833 = vmax.xlane.f32.xlu0 %v2832_v20 }
 0x663   : > { %2485 = vrot.lane.b32.xlu1 %v5883_v10, %s5455_s26 }
 0x6df   : > { %v2825_v21 = vpop.xlane.xlu1 %2824  ;;  %v2828_v23 = vpop.xlane.xlu0 %2827 }
 0x6e0   : > { %v2835_v24 = vsub.f32 %v2680_v38, %v2825_v21  ;;  %v2836_v26 = vsub.f32 %v2726_v39, %v2828_v23 }
 0x6e2   : > { %v2839_v27 = vmul.f32 1.442695, %v2835_v24  ;;  %v2841_v28 = vmul.f32 1.442695, %v2836_v26 }
 0x6e3   : > { %v2486_v41 = vpop.permute.xlu1 %2485 }
 0x6e4   : > { %5202 = vpow2.f32 %v2839_v27 }
 0x6e5   : > { %5204 = vpow2.f32 %v2841_v28 }
 0x6e7   : > { %v2831_v25 = vpop.xlane.xlu0 %2830 }
 0x6e8   : > { %v2837_v35 = vsub.f32 %v2772_v7, %v2831_v25 }
 0x6ea   : > { %v2843_v37 = vmul.f32 1.442695, %v2837_v35 }
 0x6eb   : > { %v2834_v34 = vpop.xlane.xlu0 %2833 }
 0x6ec   : > { %v2838_v36 = vsub.f32 %v2818_v16, %v2834_v34  ;;  %5206 = vpow2.f32 %v2843_v37 }
 0x6ee   : > { %v6158_v5 = vpop.eup %5202  ;;  %v2845_v43 = vmul.f32 1.442695, %v2838_v36 }
 0x6ef   : > { %v6160_v30 = vpop.eup %5204  ;;  %v2847_v31 = vsel %vm1800_vm2, %v6158_v5, 0.0 }
 0x6f0   : > { %2848 = vadd.xlane.f32.xlu1 %v2847_v31  ;;  %v2850_v33 = vsel %vm1800_vm2, %v6160_v30, 0.0  ;;  %5208 = vpow2.f32 %v2845_v43 }
 0x6f1   : > { %2851 = vadd.xlane.f32.xlu0 %v2850_v33 }
 0x6f6   : > { %v6170_v1 = vpop.eup %5206 }
 0x6f7   : > { %v2853_v39 = vsel %vm1800_vm2, %v6170_v1, 0.0 }
 0x6fa   : > { %v6172_v38 = vpop.eup %5208 }
 0x6fb   : > { %v2856_v40 = vsel %vm1800_vm2, %v6172_v38, 0.0 }
 0x701   : > { %2491 = vrot.lane.b32.xlu1 %v5883_v10, %s5456_s23 }
 0x707   : > { %2488 = vrot.lane.b32.xlu0 %v5883_v10, %s5454_s11 }
 0x725   : > { %2854 = vadd.xlane.f32.xlu1 %v2853_v39 }
 0x726   : > { %2857 = vadd.xlane.f32.xlu0 %v2856_v40 }
 0x77d   : > { %v2849_v42 = vpop.xlane.xlu1 %2848 }
 0x77e   : > { %v2852_v44 = vpop.xlane.xlu0 %2851  ;;  %5210 = vrcp.f32 %v2849_v42 }
 0x77f   : > { %5212 = vrcp.f32 %v2852_v44 }
 0x781   : > { %v2492_v45 = vpop.permute.xlu1 %2491 }
 0x782   : > { %v2510_v9 = vcombine.low %v2486_v41, %v2492_v45  ;;  %v2511_v47 = vcombine.high %v2486_v41, %v2492_v45  ;;  %v2489_v48 = vpop.permute.xlu0 %2488 }
 0x783   : > { %v2494_v49 = vcombine.low %v5883_v10, %v2489_v48  ;;  %v2495_v46 = vcombine.high %v5883_v10, %v2489_v48 }
 0x784   : > { %v2518_v50 = vrot.slane %v2510_v9, %v5894_v22  ;;  %v2525_v51 = vrot.slane %v2511_v47, %v5894_v22 }
 0x785   : > { %v2502_v52 = vrot.slane %v2494_v49, %v5894_v22  ;;  %v2509_v53 = vrot.slane %v2495_v46, %v5894_v22 }
 0x787   : > { %v2526_v54 = vcombine.low %v2502_v52, %v2518_v50  ;;  %v2527_v55 = vcombine.high %v2502_v52, %v2518_v50  ;;  %v2542_v0 = vcombine.low %v2509_v53, %v2525_v51  ;;  %v2543_v62 = vcombine.high %v2509_v53, %v2525_v51 }
 0x788   : > { %v5211_v33 = vpop.eup %5210 }
 0x789   : > { %v2534_v7 = vrot.slane %v2526_v54, %v5897_v29  ;;  %v2541_v8 = vrot.slane %v2527_v55, %v5897_v29  ;;  %v2550_v10 = vrot.slane %v2542_v0, %v5897_v29  ;;  %v2557_v11 = vrot.slane %v2543_v62, %v5897_v29  ;;  %v5213_v35 = vpop.eup %5212 }
 0x78a   : > { %v2863_v40 = vmul.f32 %v5211_v33, %v6158_v5  ;;  %v2864_v41 = vmul.f32 %v5213_v35, %v6160_v30 }
 0x78b   : > { %v2562_v13 = vcombine.low %v2534_v7, %v2541_v8  ;;  %v4582_v15 = vcombine.high %v2534_v7, %v2541_v8  ;;  %v2578_v16 = vcombine.low %v2550_v10, %v2557_v11  ;;  %v4583_v17 = vcombine.high %v2550_v10, %v2557_v11  ;;  %v5094_v7 = vld [vmem:[%s5763_s17] sm:$0xff]   ;;  %v5095_v8 = vld [vmem:[%s5763_s17 + $0x8] sm:$0xff]  }
 0x78c   : > { %v2867_v49 = vpack.c.bf16 %v2863_v40, %v2863_v40  ;;  %v2868_v46 = vpack.c.bf16 %v2864_v41, %v2864_v41  ;;  %v5098_v10 = vld [vmem:[%s5763_s17 + $0x20] sm:$0xff]   ;;  %v5099_v11 = vld [vmem:[%s5763_s17 + $0x28] sm:$0xff]  }
 0x78d   : > { %v2569_v18 = vrot.slane %v2562_v13, %v5894_v22  ;;  %v2577_v19 = vrot.slane %v4582_v15, %v5894_v22  ;;  %v2585_v20 = vrot.slane %v2578_v16, %v5894_v22  ;;  %v2593_v21 = vrot.slane %v4583_v17, %v5894_v22 }
 0x78f   : > { %v2594_v23 = vcombine.low %v2569_v18, %v2577_v19  ;;  %v2595_v24 = vcombine.high %v2569_v18, %v2577_v19  ;;  %v2610_v26 = vcombine.low %v2585_v20, %v2593_v21  ;;  %v2611_v27 = vcombine.high %v2585_v20, %v2593_v21 }
 0x791   : > { %v2602_v28 = vrot.slane %v2594_v23, %v5897_v29  ;;  %v2609_v31 = vrot.slane %v2595_v24, %v5897_v29  ;;  %v2618_v25 = vrot.slane %v2610_v26, %v5897_v29  ;;  %v2625_v34 = vrot.slane %v2611_v27, %v5897_v29 }
 0x793   : > { %v2626_v36 = vcombine.low %v2602_v28, %v2618_v25  ;;  %v2627_v37 = vcombine.high %v2602_v28, %v2618_v25  ;;  %v2628_v43 = vcombine.low %v2609_v31, %v2625_v34  ;;  %v2629_v39 = vcombine.high %v2609_v31, %v2625_v34 }
 0x795   : > { %v2871_v42 = vpack.c.bf16 %v2626_v36, %v2626_v36  ;;  %v2872_v44 = vpack.c.bf16 %v2627_v37, %v2627_v37  ;;  %v2873_v47 = vpack.c.bf16 %v2628_v43, %v2628_v43  ;;  %v2874_v48 = vpack.c.bf16 %v2629_v39, %v2629_v39 }
 0x797   : > { %v2879_v45 = vsel %vm1856_vm3, %v2871_v42, 0  ;;  %v2925_v9 = vsel %vm1856_vm3, %v2872_v44, 0  ;;  %v2971_v5 = vsel %vm1856_vm3, %v2873_v47, 0  ;;  %v3017_v30 = vsel %vm1856_vm3, %v2874_v48, 0 }
 0x798   : > { %4892 = vmatpush3.bf16.msra.mxu0 %v2879_v45  ;;  %4898 = vmatpush3.bf16.msra.mxu1 %v2925_v9 }
 0x799   : > { %4903 = vmatprep.subr.bf16.mxu0 %v5451_v6  ;;  %4909 = vmatprep.subr.bf16.mxu1 %v5451_v6 }
 0x79b   : > { %4894 = vmatmul.mubr.msk.bf16.vlgmr.msra.gmra.mrb[20].mxu0 %vm1800_vm2, %v2867_v49  ;;  %4900 = vmatmul.mubr.msk.bf16.vlgmr.msra.gmra.mrb[36].mxu1 %vm1800_vm2, %v2868_v46 }
 0x79c   : > { %4904 = vmatpush3.bf16.msra.mxu0 %v2971_v5  ;;  %4910 = vmatpush3.bf16.msra.mxu1 %v3017_v30 }
 0x79d   : > { %4905 = vmatprep.mubr.msk.bf16.mxu0 %vm5453_vm0, %v5451_v6  ;;  %4911 = vmatprep.mubr.msk.bf16.mxu1 %vm5453_vm0, %v5451_v6 }
 0x79e   : > { %4915 = vmatprep.subr.bf16.mxu0 %v5451_v6 }
 0x7b2   : > { %v2855_v50 = vpop.xlane.xlu1 %2854 }
 0x7b3   : > { %5214 = vrcp.f32 %v2855_v50  ;;  %v2858_v51 = vpop.xlane.xlu0 %2857 }
 0x7b4   : > { %5216 = vrcp.f32 %v2858_v51 }
 0x7bd   : > { %v5215_v52 = vpop.eup %5214 }
 0x7be   : > { %v5217_v53 = vpop.eup %5216  ;;  %v2865_v54 = vmul.f32 %v5215_v52, %v6170_v1  ;;  %v5096_v1 = vld [vmem:[%s5763_s17 + $0x10] sm:$0xff]  }
 0x7bf   : > { %v2866_v55 = vmul.f32 %v5217_v53, %v6172_v38  ;;  %v5097_v38 = vld [vmem:[%s5763_s17 + $0x18] sm:$0xff]   ;;  %v5100_v52 = vld [vmem:[%s5763_s17 + $0x30] sm:$0xff]  }
 0x7c0   : > { %v2869_v0 = vpack.c.bf16 %v2865_v54, %v2865_v54 }
 0x7c1   : > { %v2870_v62 = vpack.c.bf16 %v2866_v55, %v2866_v55 }
 0x7c2   : > { %4906 = vmatmul.mubr.msk.bf16.vlgmr.msra.gmra.mrb[24].mxu0 %vm1800_vm2, %v2869_v0 }
 0x7c3   : > { %4912 = vmatmul.mubr.msk.bf16.vlgmr.msra.gmra.mrb[40].mxu1 %vm1800_vm2, %v2870_v62  ;;  %4931 = vmatprep.mubr.msk.bf16.mxu0 %vm5453_vm0, %v5451_v6 }
 0x7c4   : > { %3612 = vmatprep.mubr.bf16.mxu1 %v5452_v32  ;;  %4916 = vmatpush3.bf16.msra.mxu0 %v5094_v7 }
 0x7c5   : > { %4917 = vmatprep.subr.bf16.mxu0 %v5451_v6 }
 0x7c8   : > { %4918 = vmatpush3.bf16.msra.mxu0 %v5095_v8 }
 0x7c9   : > { %4919 = vmatprep.subr.bf16.mxu0 %v5451_v6 }
 0x7cc   : > { %4920 = vmatpush3.bf16.msra.mxu0 %v5096_v1 }
 0x7cd   : > { %4921 = vmatprep.subr.bf16.mxu0 %v5451_v6 }
 0x7d0   : > { %4922 = vmatpush3.bf16.msra.mxu0 %v5097_v38  ;;  %v5101_v38 = vld [vmem:[%s5763_s17 + $0x38] sm:$0xff]  }
 0x7d1   : > { %4923 = vmatprep.subr.bf16.mxu0 %v5451_v6 }
 0x7d4   : > { %4924 = vmatpush3.bf16.msra.mxu0 %v5098_v10 }
 0x7d5   : > { %4925 = vmatprep.subr.bf16.mxu0 %v5451_v6 }
 0x7d8   : > { %4926 = vmatpush3.bf16.msra.mxu0 %v5099_v11 }
 0x7d9   : > { %4927 = vmatprep.subr.bf16.mxu0 %v5451_v6 }
 0x7dc   : > { %4928 = vmatpush3.bf16.msra.mxu0 %v5100_v52 }
 0x7dd   : > { %4929 = vmatprep.subr.bf16.mxu0 %v5451_v6 }
 0x7e0   : > { %4930 = vmatpush3.bf16.msra.mxu0 %v5101_v38  ;;  %v5125_v38 = vld [vmem:[%s5740_s29 + $0x6c] ss:$16 sps:$4 sm:$0xff]  }
 0x86e   : > { %v2915_v13 = vpop.f32.mrb[20].mxu0  ;;  %v2961_v15 = vpop.f32.mrb[36].mxu1 }
 0x86f   : > { %v4895_v16 = vpop.f32.mrb[21].mxu0  ;;  %v4901_v17 = vpop.f32.mrb[37].mxu1 }
 0x870   : > { %v2918_v18 = vpop.f32.mrb[22].mxu0  ;;  %v2964_v19 = vpop.f32.mrb[38].mxu1 }
 0x871   : > { %v4896_v20 = vpop.f32.mrb[23].mxu0  ;;  %v4902_v21 = vpop.f32.mrb[39].mxu1 }
 0x895   : > { %v3007_v23 = vpop.f32.mrb[24].mxu0 }
 0x896   : > { %v3059_v24 = vcombine.low %v2915_v13, %v3007_v23  ;;  %v3060_v26 = vcombine.high %v2915_v13, %v3007_v23  ;;  %v3053_v27 = vpop.f32.mrb[40].mxu1  ;;  %v4907_v28 = vpop.f32.mrb[25].mxu0 }
 0x897   : > { %v3075_v31 = vcombine.low %v2961_v15, %v3053_v27  ;;  %v3076_v33 = vcombine.high %v2961_v15, %v3053_v27  ;;  %v4913_v25 = vpop.f32.mrb[41].mxu1  ;;  %v3010_v34 = vpop.f32.mrb[26].mxu0 }
 0x898   : > { %v3067_v35 = vrot.slane %v3059_v24, %v5894_v22  ;;  %v3074_v36 = vrot.slane %v3060_v26, %v5894_v22  ;;  %v3056_v37 = vpop.f32.mrb[42].mxu1  ;;  %v4908_v43 = vpop.f32.mrb[27].mxu0 }
 0x899   : > { %v3083_v39 = vrot.slane %v3075_v31, %v5894_v22  ;;  %v3090_v40 = vrot.slane %v3076_v33, %v5894_v22  ;;  %v4914_v41 = vpop.f32.mrb[43].mxu1  ;;  %v5254_v37 = vld [vmem:[#allocation2] sm:$0xff] }
 0x89b   : > { %v3091_v42 = vcombine.low %v3067_v35, %v3083_v39  ;;  %v3092_v44 = vcombine.high %v3067_v35, %v3083_v39  ;;  %v3107_v45 = vcombine.low %v3074_v36, %v3090_v40  ;;  %v3108_v9 = vcombine.high %v3074_v36, %v3090_v40 }
 0x89d   : > { %v3099_v47 = vrot.slane %v3091_v42, %v5897_v29  ;;  %v3106_v48 = vrot.slane %v3092_v44, %v5897_v29  ;;  %v3115_v49 = vrot.slane %v3107_v45, %v5897_v29  ;;  %v3122_v46 = vrot.slane %v3108_v9, %v5897_v29  ;;  %v5102_v42 = vld [vmem:[%s5740_s29] ss:$16 sps:$4 sm:$0xff]   ;;  %v5104_v44 = vld [vmem:[%s5740_s29 + $0x4] ss:$16 sps:$4 sm:$0xff]   ;;  %v5105_v45 = vld [vmem:[%s5740_s29 + $0x8] ss:$16 sps:$4 sm:$0xff]  }
 0x89e   : > { %v5107_v9 = vld [vmem:[%s5740_s29 + $0xc] ss:$16 sps:$4 sm:$0xff]   ;;  %3580 = vmatprep.subr.bf16.mxu1 %v5104_v44  ;;  %v5152_v44 = vld [vmem:[%s5792_s21] sm:$0xff]  }
 0x89f   : > { %v3127_v5 = vcombine.low %v3099_v47, %v3106_v48  ;;  %v4592_v30 = vcombine.high %v3099_v47, %v3106_v48  ;;  %v3143_v50 = vcombine.low %v3115_v49, %v3122_v46  ;;  %v4593_v51 = vcombine.high %v3115_v49, %v3122_v46  ;;  %v5110_v47 = vld [vmem:[%s5740_s29 + $0x24] ss:$16 sps:$4 sm:$0xff]   ;;  %v5113_v48 = vld [vmem:[%s5740_s29 + $0x2c] ss:$16 sps:$4 sm:$0xff]   ;;  %3623 = vmatprep.subr.bf16.mxu0 %v5107_v9  ;;  %v5108_v49 = vld [vmem:[%s5740_s29 + $0x20] ss:$16 sps:$4 sm:$0xff]  }
 0x8a0   : > { %3581 = vmatpush1.bf16.msra.mxu1 %v5102_v42  ;;  %v5111_v46 = vld [vmem:[%s5740_s29 + $0x28] ss:$16 sps:$4 sm:$0xff]   ;;  %v5151_v42 = vld [vmem:[%s5792_s21 + $0xc0] sm:$0xff]  }
 0x8a1   : > { %v3134_v53 = vrot.slane %v3127_v5, %v5894_v22  ;;  %v3142_v54 = vrot.slane %v4592_v30, %v5894_v22  ;;  %v3150_v55 = vrot.slane %v3143_v50, %v5894_v22  ;;  %v3158_v0 = vrot.slane %v4593_v51, %v5894_v22  ;;  %3582 = vmatprep.subr.bf16.mxu1 %v5110_v47  ;;  %v5154_v9 = vld [vmem:[%s5792_s21 + $0x48] sm:$0xff]  }
 0x8a2   : > { %v5155_v47 = vld [vmem:[%s5792_s21 + $0xc8] sm:$0xff]  }
 0x8a3   : > { %v3160_v62 = vcombine.high %v3134_v53, %v3142_v54  ;;  %v3176_v7 = vcombine.high %v3150_v55, %v3158_v0  ;;  %v3159_v8 = vcombine.low %v3134_v53, %v3142_v54  ;;  %v3175_v1 = vcombine.low %v3150_v55, %v3158_v0  ;;  %v5116_v0 = vld [vmem:[%s5740_s29 + $0x44] ss:$16 sps:$4 sm:$0xff]  }
 0x8a4   : > { %3583 = vmatpush1.bf16.msra.mxu1 %v5108_v49  ;;  %v5157_v49 = vld [vmem:[%s5792_s21 + $0x88] sm:$0xff]  }
 0x8a5   : > { %v3174_v10 = vrot.slane %v3160_v62, %v5897_v29  ;;  %v3190_v11 = vrot.slane %v3176_v7, %v5897_v29  ;;  %v3167_v13 = vrot.slane %v3159_v8, %v5897_v29  ;;  %v3183_v15 = vrot.slane %v3175_v1, %v5897_v29  ;;  %v5119_v62 = vld [vmem:[%s5740_s29 + $0x4c] ss:$16 sps:$4 sm:$0xff]   ;;  %v5114_v7 = vld [vmem:[%s5740_s29 + $0x40] ss:$16 sps:$4 sm:$0xff]   ;;  %v5117_v8 = vld [vmem:[%s5740_s29 + $0x48] ss:$16 sps:$4 sm:$0xff]   ;;  %3584 = vmatprep.subr.bf16.mxu1 %v5116_v0 }
 0x8a6   : > { %v5122_v1 = vld [vmem:[%s5740_s29 + $0x64] ss:$16 sps:$4 sm:$0xff]  }
 0x8a7   : > { %v3193_v16 = vcombine.low %v3174_v10, %v3190_v11  ;;  %v3192_v17 = vcombine.high %v3167_v13, %v3183_v15  ;;  %v3191_v22 = vcombine.low %v3167_v13, %v3183_v15  ;;  %v3194_v18 = vcombine.high %v3174_v10, %v3190_v11  ;;  %v5120_v10 = vld [vmem:[%s5740_s29 + $0x60] ss:$16 sps:$4 sm:$0xff]   ;;  %v5123_v11 = vld [vmem:[%s5740_s29 + $0x68] ss:$16 sps:$4 sm:$0xff]   ;;  %v5128_v13 = vld [vmem:[%s5740_s29 + $0x84] ss:$16 sps:$4 sm:$0xff]  }
 0x8a8   : > { %3585 = vmatpush1.bf16.msra.mxu1 %v5114_v7  ;;  %v5131_v15 = vld [vmem:[%s5740_s29 + $0x8c] ss:$16 sps:$4 sm:$0xff]   ;;  %v5167_v0 = vld [vmem:[%s5792_s21 + $0xe0] sm:$0xff]  }
 0x8a9   : > { %v5052_v6 = vpack.i.bf16 %v3193_v16, %v2172_v3  ;;  %v5047_v19 = vpack.i.bf16 %v3192_v17, %v2171_v14  ;;  %v5057_v20 = vpack.i.bf16 %v3194_v18, %v2173_v4  ;;  %3586 = vmatprep.subr.bf16.mxu1 %v5122_v1  ;;  %v5126_v16 = vld [vmem:[%s5740_s29 + $0x80] ss:$16 sps:$4 sm:$0xff]   ;;  %v5129_v17 = vld [vmem:[%s5740_s29 + $0x88] ss:$16 sps:$4 sm:$0xff]   ;;  %v5137_v18 = vld [vmem:[%s5740_s29 + $0xac] ss:$16 sps:$4 sm:$0xff]  }
 0x8aa   : > { %v5169_v7 = vld [vmem:[%s5792_s21 + $0xa0] sm:$0xff]   ;;  %v5171_v1 = vld [vmem:[%s5792_s21 + $0xe8] sm:$0xff]  }
 0x8ab   : > { %5053 = vrot.lane.b32.xlu1 %v5052_v6, %s5454_s11  ;;  %5048 = vrot.lane.b32.xlu0 %v5047_v19, %s5456_s23  ;;  %v5132_v6 = vld [vmem:[%s5740_s29 + $0xa0] ss:$16 sps:$4 sm:$0xff]   ;;  %v5135_v19 = vld [vmem:[%s5740_s29 + $0xa8] ss:$16 sps:$4 sm:$0xff]  }
 0x8ac   : > { %3587 = vmatpush1.bf16.msra.mxu1 %v5120_v10  ;;  %v5173_v10 = vld [vmem:[%s5792_s21 + $0xa8] sm:$0xff]  }
 0x8ad   : > { %3588 = vmatprep.subr.bf16.mxu1 %v5128_v13  ;;  %v5175_v13 = vld [vmem:[%s5792_s21 + $0xf0] sm:$0xff]  }
 0x8af   : > { %5058 = vrot.lane.b32.xlu1 %v5057_v20, %s5455_s26  ;;  %v5140_v20 = vld [vmem:[%s5740_s29 + $0xc4] ss:$16 sps:$4 sm:$0xff]  }
 0x8b0   : > { %3589 = vmatpush1.bf16.msra.mxu1 %v5126_v16  ;;  %v5177_v16 = vld [vmem:[%s5792_s21 + $0xb0] sm:$0xff]  }
 0x91d   : > { %v5054_v29 = vpop.permute.xlu1 %5053  ;;  %v5049_v21 = vpop.permute.xlu0 %5048 }
 0x91e   : > { %v5051_v23 = vunpack.i.h.bf16 %v5049_v21  ;;  %v5050_v24 = vunpack.i.l.bf16 %v5049_v21  ;;  %v5056_v26 = vunpack.i.h.bf16 %v5054_v29  ;;  %v5055_v3 = vunpack.i.l.bf16 %v5054_v29  ;;  %v5143_v29 = vld [vmem:[%s5740_s29 + $0xcc] ss:$16 sps:$4 sm:$0xff]   ;;  %v5138_v21 = vld [vmem:[%s5740_s29 + $0xc0] ss:$16 sps:$4 sm:$0xff]  }
 0x920   : > { %v2186_v14 = vsel %vm1615_vm1, %v2170_v12, %v5050_v24  ;;  %v3207_v59 = vsel %vm1615_vm1, %v3191_v22, %v5051_v23  ;;  %v5134_v22 = vld [vmem:[%s5740_s29 + $0xa4] ss:$16 sps:$4 sm:$0xff]   ;;  %v5141_v23 = vld [vmem:[%s5740_s29 + $0xc8] ss:$16 sps:$4 sm:$0xff]  }
 0x921   : > { %v5059_v61 = vpop.permute.xlu1 %5058  ;;  %v2188_v28 = vsel %vm2187_vm4, %v2186_v14, %v5055_v3  ;;  %v3208_v31 = vsel %vm2187_vm4, %v3207_v59, %v5056_v26  ;;  %3590 = vmatprep.subr.bf16.mxu1 %v5134_v22  ;;  %v5146_v24 = vld [vmem:[%s5740_s29 + $0xe4] ss:$16 sps:$4 sm:$0xff]   ;;  %v5149_v26 = vld [vmem:[%s5740_s29 + $0xec] ss:$16 sps:$4 sm:$0xff]   ;;  %v5144_v3 = vld [vmem:[%s5740_s29 + $0xe0] ss:$16 sps:$4 sm:$0xff]  }
 0x922   : > { %v5061_v4 = vunpack.i.h.bf16 %v5059_v61  ;;  %v5060_v27 = vunpack.i.l.bf16 %v5059_v61  ;;  %3591 = vmatpush1.bf16.msra.mxu1 %v5132_v6  ;;  %v5147_v14 = vld [vmem:[%s5740_s29 + $0xe8] ss:$16 sps:$4 sm:$0xff]  }
 0x923   : > { %3592 = vmatprep.subr.bf16.mxu1 %v5140_v20  ;;  %v5179_v22 = vld [vmem:[%s5792_s21 + $0xf8] sm:$0xff]   ;;  %v3414_v20 = vsub.s32 3, %v5862_v56 }
 0x924   : > { %v2190_v33 = vsel %vm2189_vm5, %v2188_v28, %v5060_v27  ;;  %v3209_v25 = vsel %vm2189_vm5, %v3208_v31, %v5061_v4  ;;  %v5181_v6 = vld [vmem:[%s5792_s21 + $0xb8] sm:$0xff]  }
 0x925   : > { %v3210_v34 = vpack.c.bf16 %v3209_v25, %v2190_v33 }
 0x926   : > { %3593 = vmatpush1.bf16.msra.mxu1 %v5138_v21 }
 0x927   : > { %4932 = vmatmul.mubr.bf16.vlgmr.msra.gmra.mrb[28].mxu0 %v3210_v34  ;;  %3594 = vmatprep.subr.bf16.mxu1 %v5146_v24  ;;  %v4603_v34 = vld [vmem:[%s842_s2] ss:$0 sm:$0xff] }
 0x928   : > { %3655 = vmatprep.mubr.bf16.mxu0 %v5452_v32  ;;  %v5255_v32 = vld [vmem:[#allocation2 + $0x8] sm:$0xff]  ;;  %3624 = vmatpush1.bf16.msra.mxu0 %v5105_v45  ;;  %v5153_v45 = vld [vmem:[%s5792_s21 + $0x80] sm:$0xff]  }
 0x929   : > { %3625 = vmatprep.subr.bf16.mxu0 %v5113_v48  ;;  %v5156_v48 = vld [vmem:[%s5792_s21 + $0x8] sm:$0xff]  }
 0x92a   : > { %3595 = vmatpush1.bf16.msra.mxu1 %v5144_v3 }
 0x92c   : > { %3626 = vmatpush1.bf16.msra.mxu0 %v5111_v46  ;;  %v5158_v46 = vld [vmem:[%s5792_s21 + $0x50] sm:$0xff]  }
 0x92d   : > { %3627 = vmatprep.subr.bf16.mxu0 %v5119_v62  ;;  %v5168_v62 = vld [vmem:[%s5792_s21 + $0x20] sm:$0xff]  }
 0x930   : > { %3628 = vmatpush1.bf16.msra.mxu0 %v5117_v8  ;;  %v5170_v8 = vld [vmem:[%s5792_s21 + $0x68] sm:$0xff]  }
 0x931   : > { %3629 = vmatprep.subr.bf16.mxu0 %v5125_v38  ;;  %v5172_v38 = vld [vmem:[%s5792_s21 + $0x28] sm:$0xff]  }
 0x934   : > { %3630 = vmatpush1.bf16.msra.mxu0 %v5123_v11  ;;  %v5174_v11 = vld [vmem:[%s5792_s21 + $0x70] sm:$0xff]  }
 0x935   : > { %3631 = vmatprep.subr.bf16.mxu0 %v5131_v15  ;;  %v5176_v15 = vld [vmem:[%s5792_s21 + $0x30] sm:$0xff]  }
 0x938   : > { %3632 = vmatpush1.bf16.msra.mxu0 %v5129_v17  ;;  %v5178_v17 = vld [vmem:[%s5792_s21 + $0x78] sm:$0xff]  }
 0x939   : > { %3633 = vmatprep.subr.bf16.mxu0 %v5137_v18  ;;  %v5180_v18 = vld [vmem:[%s5792_s21 + $0x38] sm:$0xff]  }
 0x93c   : > { %3634 = vmatpush1.bf16.msra.mxu0 %v5135_v19  ;;  %v3398_v19 = vld [vmem:[%s5786_s19] sm:$0xf]  ;;  %s6547_s19 = sld [smem:[#allocation29_spill]] (!%p4678_p7) }
 0x93d   : > { %3635 = vmatprep.subr.bf16.mxu0 %v5143_v29  ;;  %v3403_v29 = vrot.slane %v3398_v19, %v5865_v57  ;;  %v3411_v21 = vrot.slane %v3398_v19, %v950_v60  ;;  %v3415_v24 = vrot.slane %v3398_v19, %v3414_v20 }
 0x940   : > { %3636 = vmatpush1.bf16.msra.mxu0 %v5141_v23  ;;  %v3407_v23 = vrot.slane %v3398_v19, %v5868_v58 }
 0x941   : > { %3637 = vmatprep.subr.bf16.mxu0 %v5149_v26 }
 0x944   : > { %3638 = vmatpush1.bf16.msra.mxu0 %v5147_v14 }
 0x945   : > { %4768 = vmatprep.subr.bf16.mxu0 %v5151_v42 }
 0x9fa   : > { %v3316_v63 = vpop.f32.mrb[28].mxu0 }
 0x9fb   : > { %v3317_v12 = vadd.f32 %v4594_v2, %v3316_v63  ;;  %v4933_v35 = vpop.f32.mrb[29].mxu0 }
 0x9fc   : > { %v3319_v36 = vpop.f32.mrb[30].mxu0  ;;  %v4604_v35 = vld [vmem:[%s845_s28] ss:$0 sm:$0xff] }
 0x9fd   : > { %v6272_v43 = vadd.f32 %v5254_v37, %v3317_v12  ;;  %v3320_v39 = vadd.f32 %v4594_v2, %v3319_v36  ;;  %v4934_v40 = vpop.f32.mrb[31].mxu0 }
 0x9ff   : > { %v6274_v41 = vadd.f32 %v5255_v32, %v3320_v39  ;;  %3327 = vadd.xlane.f32.xlu1 %v6272_v43  ;;  %v5150_v32 = vld [vmem:[%s5792_s21 + $0x40] sm:$0xff]  }
 0xa00   : > { %4746 = vmatprep.subr.bf16.mxu1 %v5150_v32 }
 0xa01   : > { %3329 = vadd.xlane.f32.xlu0 %v6274_v41 }
 0xa8c   : > { %v3328_v5 = vpop.xlane.xlu1 %3327 }
 0xa8d   : > { %v3331_v30 = vmul.f32 0.0078125, %v3328_v5  ;;  %v5159_v5 = vld [vmem:[%s5792_s21 + $0xd0] sm:$0xff]  }
 0xa8e   : > { %v3330_v50 = vpop.xlane.xlu0 %3329 }
 0xa8f   : > { %v6287_v51 = vsub.f32 %v6272_v43, %v3331_v30  ;;  %v3332_v52 = vmul.f32 0.0078125, %v3330_v50  ;;  %v5160_v30 = vld [vmem:[%s5792_s21 + $0x10] sm:$0xff]  }
 0xa90   : > { %v5161_v50 = vld [vmem:[%s5792_s21 + $0x90] sm:$0xff]  }
 0xa91   : > { %v6290_v53 = vsub.f32 %v6274_v41, %v3332_v52  ;;  %v3335_v54 = vmul.f32 %v6287_v51, %v6287_v51  ;;  %v5163_v52 = vld [vmem:[%s5792_s21 + $0xd8] sm:$0xff]  }
 0xa93   : > { %3337 = vadd.xlane.f32.xlu0 %v3335_v54  ;;  %v3336_v55 = vmul.f32 %v6290_v53, %v6290_v53  ;;  %v5165_v54 = vld [vmem:[%s5792_s21 + $0x98] sm:$0xff]  }
 0xa97   : > { %3339 = vadd.xlane.f32.xlu0 %v3336_v55  ;;  %v5166_v55 = vld [vmem:[%s5792_s21 + $0x60] sm:$0xff]  }
 0xb20   : > { %v3338_v59 = vpop.xlane.xlu0 %3337 }
 0xb21   : > { %v3341_v61 = vmul.f32 0.0078125, %v3338_v59 }
 0xb23   : > { %v3343_v4 = vadd.f32 1e-05, %v3341_v61 }
 0xb24   : > { %v3340_v27 = vpop.xlane.xlu0 %3339 }
 0xb25   : > { %5218 = vrsqrt.f32 %v3343_v4  ;;  %v3342_v28 = vmul.f32 0.0078125, %v3340_v27 }
 0xb27   : > { %v3344_v31 = vadd.f32 1e-05, %v3342_v28 }
 0xb29   : > { %5220 = vrsqrt.f32 %v3344_v31 }
 0xb2f   : > { %v5219_v33 = vpop.eup %5218 }
 0xb30   : > { %v3347_v25 = vmul.f32 %v5219_v33, %v6287_v51  ;;  %v5162_v51 = vld [vmem:[%s5792_s21 + $0x58] sm:$0xff]  }
 0xb32   : > { %v3355_v12 = vmul.f32 %v4603_v34, %v3347_v25 }
 0xb33   : > { %v5221_v2 = vpop.eup %5220 }
 0xb34   : > { %v3348_v63 = vmul.f32 %v5221_v2, %v6290_v53  ;;  %v3363_v37 = vadd.f32 %v4604_v35, %v3355_v12  ;;  %v5164_v53 = vld [vmem:[%s5792_s21 + $0x18] sm:$0xff]   ;;  %s6545_s21 = sld [smem:[#allocation20_spill]] (!%p4678_p7) }
 0xb36   : > { %v3356_v36 = vmul.f32 %v4603_v34, %v3348_v63 }
 0xb38   : > { %v3364_v39 = vadd.f32 %v4604_v35, %v3356_v36 }
 0xb3a   : > { %v3365_v40 = vpack.c.bf16 %v3364_v39, %v3363_v37 }
 0xb3c   : > { %3613 = vmatmul.mubr.bf16.vlgmr.msra.gmra.mrb[44].mxu1 %v3365_v40  ;;  %3656 = vmatmul.mubr.bf16.vlgmr.msra.gmra.mrb[32].mxu0 %v3365_v40 }
 0xb3d   : > { %4747 = vmatpush3.bf16.msra.mxu1 %v5152_v44  ;;  %4769 = vmatpush3.bf16.msra.mxu0 %v5153_v45 }
 0xb3e   : > { %4748 = vmatprep.subr.bf16.mxu1 %v5154_v9  ;;  %4770 = vmatprep.subr.bf16.mxu0 %v5155_v47 }
 0xb41   : > { %4749 = vmatpush3.bf16.msra.mxu1 %v5156_v48  ;;  %4771 = vmatpush3.bf16.msra.mxu0 %v5157_v49 }
 0xb42   : > { %4750 = vmatprep.subr.bf16.mxu1 %v5158_v46  ;;  %4772 = vmatprep.subr.bf16.mxu0 %v5159_v5 }
 0xb45   : > { %4751 = vmatpush3.bf16.msra.mxu1 %v5160_v30  ;;  %4773 = vmatpush3.bf16.msra.mxu0 %v5161_v50 }
 0xb46   : > { %4752 = vmatprep.subr.bf16.mxu1 %v5162_v51  ;;  %4774 = vmatprep.subr.bf16.mxu0 %v5163_v52 }
 0xb49   : > { %4753 = vmatpush3.bf16.msra.mxu1 %v5164_v53  ;;  %4775 = vmatpush3.bf16.msra.mxu0 %v5165_v54 }
 0xb4a   : > { %4754 = vmatprep.subr.bf16.mxu1 %v5166_v55  ;;  %4776 = vmatprep.subr.bf16.mxu0 %v5167_v0 }
 0xb4d   : > { %4755 = vmatpush3.bf16.msra.mxu1 %v5168_v62  ;;  %4777 = vmatpush3.bf16.msra.mxu0 %v5169_v7 }
 0xb4e   : > { %4756 = vmatprep.subr.bf16.mxu1 %v5170_v8  ;;  %4778 = vmatprep.subr.bf16.mxu0 %v5171_v1 }
 0xb51   : > { %4757 = vmatpush3.bf16.msra.mxu1 %v5172_v38  ;;  %4779 = vmatpush3.bf16.msra.mxu0 %v5173_v10 }
 0xb52   : > { %4758 = vmatprep.subr.bf16.mxu1 %v5174_v11  ;;  %4780 = vmatprep.subr.bf16.mxu0 %v5175_v13 }
 0xb55   : > { %4759 = vmatpush3.bf16.msra.mxu1 %v5176_v15  ;;  %4781 = vmatpush3.bf16.msra.mxu0 %v5177_v16 }
 0xb56   : > { %4760 = vmatprep.subr.bf16.mxu1 %v5178_v17  ;;  %4782 = vmatprep.subr.bf16.mxu0 %v5179_v22 }
 0xb59   : > { %4761 = vmatpush3.bf16.msra.mxu1 %v5180_v18  ;;  %4783 = vmatpush3.bf16.msra.mxu0 %v5181_v6 }
 0xc0f   : > { %v3614_v26 = vpop.f32.mrb[44].mxu1  ;;  %v3657_v3 = vpop.f32.mrb[32].mxu0 }
 0xc10   : > { %v6370_v14 = vadd.f32 %v3614_v26, %v3403_v29  ;;  %v6372_v59 = vadd.f32 %v3657_v3, %v3411_v21  ;;  %v3616_v61 = vpop.f32.mrb[45].mxu1  ;;  %v3659_v4 = vpop.f32.mrb[33].mxu0 }
 0xc11   : > { %v6374_v27 = vadd.f32 %v3616_v61, %v3407_v23  ;;  %v6376_v28 = vadd.f32 %v3659_v4, %v3415_v24  ;;  %v3618_v31 = vpop.f32.mrb[46].mxu1  ;;  %v3661_v33 = vpop.f32.mrb[34].mxu0 }
 0xc12   : > { %v4637_v56 = vmul.f32 -1.702, %v6370_v14  ;;  %v4639_v60 = vmul.f32 -1.702, %v6372_v59  ;;  %v3619_v25 = vadd.f32 %v3618_v31, %v3403_v29  ;;  %v3662_v34 = vadd.f32 %v3661_v33, %v3411_v21  ;;  %v3620_v2 = vpop.f32.mrb[47].mxu1  ;;  %v3663_v63 = vpop.f32.mrb[35].mxu0 }
 0xc13   : > { %v4638_v12 = vmul.f32 -1.702, %v6374_v27  ;;  %v4640_v35 = vmul.f32 -1.702, %v6376_v28  ;;  %v3621_v36 = vadd.f32 %v3620_v2, %v3407_v23  ;;  %v3664_v37 = vadd.f32 %v3663_v63, %v3415_v24 }
 0xc14   : > { %v3682_v39 = vmul.f32 1.442695, %v4637_v56  ;;  %v3686_v40 = vmul.f32 1.442695, %v4639_v60  ;;  %v4641_v32 = vmul.f32 -1.702, %v3619_v25 }
 0xc15   : > { %v3684_v42 = vmul.f32 1.442695, %v4638_v12  ;;  %v3688_v44 = vmul.f32 1.442695, %v4640_v35  ;;  %v4643_v45 = vmul.f32 -1.702, %v3662_v34 }
 0xc16   : > { %5222 = vpow2.f32 %v3682_v39  ;;  %v3690_v9 = vmul.f32 1.442695, %v4641_v32  ;;  %v4642_v47 = vmul.f32 -1.702, %v3621_v36  ;;  %v4644_v48 = vmul.f32 -1.702, %v3664_v37 }
 0xc17   : > { %5224 = vpow2.f32 %v3686_v40  ;;  %v3694_v49 = vmul.f32 1.442695, %v4643_v45 }
 0xc18   : > { %5226 = vpow2.f32 %v3684_v42  ;;  %v3692_v46 = vmul.f32 1.442695, %v4642_v47  ;;  %v3696_v5 = vmul.f32 1.442695, %v4644_v48  ;;  %v4087_v47 = vld [vmem:[%s6545_s21] sm:$0x3] (!%p4678_p7) }
 0xc19   : > { %5228 = vpow2.f32 %v3688_v44  ;;  %v4091_v48 = vrot.slane (!%p4678_p7), %v4087_v47, %v5865_v57 }
 0xc1a   : > { %5230 = vpow2.f32 %v3690_v9 }
 0xc1b   : > { %5232 = vpow2.f32 %v3694_v49  ;;  %4093 = vbcast.lane.b32.xlu0 (!%p4678_p7), %v4091_v48, 256  ;;  %v4098_v49 = vrot.slane (!%p4678_p7), %v4087_v47, %v5868_v58 }
 0xc1c   : > { %5234 = vpow2.f32 %v3692_v46 }
 0xc1d   : > { %5236 = vpow2.f32 %v3696_v5 }
 0xc1f   : > { %4100 = vbcast.lane.b32.xlu0 (!%p4678_p7), %v4098_v49, 256 }
 0xc20   : > { %v5223_v30 = vpop.eup %5222 }
 0xc21   : > { %v5225_v50 = vpop.eup %5224  ;;  %v3698_v51 = vadd.f32 1.0, %v5223_v30 }
 0xc22   : > { %v5227_v52 = vpop.eup %5226  ;;  %v3700_v53 = vadd.f32 1.0, %v5225_v50 }
 0xc23   : > { %v5229_v54 = vpop.eup %5228  ;;  %5238 = vrcp.f32 %v3698_v51  ;;  %v3699_v55 = vadd.f32 1.0, %v5227_v52 }
 0xc24   : > { %v5231_v0 = vpop.eup %5230  ;;  %5240 = vrcp.f32 %v3700_v53  ;;  %v3701_v62 = vadd.f32 1.0, %v5229_v54 }
 0xc25   : > { %v5233_v7 = vpop.eup %5232  ;;  %5242 = vrcp.f32 %v3699_v55  ;;  %v3702_v8 = vadd.f32 1.0, %v5231_v0 }
 0xc26   : > { %v5235_v1 = vpop.eup %5234  ;;  %5244 = vrcp.f32 %v3701_v62  ;;  %v3704_v38 = vadd.f32 1.0, %v5233_v7 }
 0xc27   : > { %v5237_v10 = vpop.eup %5236  ;;  %5246 = vrcp.f32 %v3702_v8  ;;  %v3703_v11 = vadd.f32 1.0, %v5235_v1 }
 0xc28   : > { %5248 = vrcp.f32 %v3704_v38  ;;  %v3705_v13 = vadd.f32 1.0, %v5237_v10 }
 0xc29   : > { %5250 = vrcp.f32 %v3703_v11 }
 0xc2a   : > { %5252 = vrcp.f32 %v3705_v13 }
 0xc2d   : > { %v5239_v15 = vpop.eup %5238 }
 0xc2e   : > { %v5241_v16 = vpop.eup %5240  ;;  %v3722_v19 = vmul.f32 %v5239_v15, %v6370_v14 }
 0xc2f   : > { %v5243_v17 = vpop.eup %5242  ;;  %v3724_v21 = vmul.f32 %v5241_v16, %v6372_v59  ;;  %v4645_v59 = vld [vmem:[%s852_s14] ss:$0 sm:$0xff]  ;;  %s6548_s14 = sld [smem:[#allocation30_spill]] (!%p4678_p7) }
 0xc30   : > { %v5245_v22 = vpop.eup %5244  ;;  %v3723_v26 = vmul.f32 %v5243_v17, %v6374_v27 }
 0xc31   : > { %v5247_v18 = vpop.eup %5246  ;;  %v3725_v4 = vmul.f32 %v5245_v22, %v6376_v28 }
 0xc32   : > { %v5249_v6 = vpop.eup %5248  ;;  %v3726_v20 = vmul.f32 %v5247_v18, %v3619_v25 }
 0xc33   : > { %v5251_v29 = vpop.eup %5250  ;;  %v3728_v23 = vmul.f32 %v5249_v6, %v3662_v34 }
 0xc34   : > { %v5253_v24 = vpop.eup %5252  ;;  %v3730_v3 = vpack.c.bf16 %v3726_v20, %v3722_v19  ;;  %v3727_v61 = vmul.f32 %v5251_v29, %v3621_v36  ;;  %v5256_v19 = vld [vmem:[%s6546_s24] sm:$0xff] (!%p4678_p7)   ;;  %v5459_v20 = vmov (!%p4678_p7), 0.0   ;;  %v5257_v29 = vld [vmem:[%s6546_s24 + $0x8] sm:$0xff] (!%p4678_p7)  }
 0xc35   : > { %v3732_v31 = vpack.c.bf16 %v3728_v23, %v3724_v21  ;;  %v3729_v33 = vmul.f32 %v5253_v24, %v3664_v37  ;;  %4935 = vmatprep.subr.bf16.mxu0 (!%p4678_p7), %v5459_v20  ;;  %v5258_v21 = vld [vmem:[%s6546_s24 + $0x10] sm:$0xff] (!%p4678_p7)   ;;  %v5259_v23 = vld [vmem:[%s6546_s24 + $0x18] sm:$0xff] (!%p4678_p7)   ;;  %v5260_v24 = vld [vmem:[%s6546_s24 + $0x20] sm:$0xff] (!%p4678_p7)  }
 0xc36   : > { %v3731_v56 = vpack.c.bf16 %v3727_v61, %v3723_v26  ;;  %v5261_v26 = vld [vmem:[%s6546_s24 + $0x28] sm:$0xff] (!%p4678_p7)   ;;  %v5263_v61 = vld [vmem:[%s6546_s24 + $0x38] sm:$0xff] (!%p4678_p7)  }
 0xc37   : > { %v3733_v60 = vpack.c.bf16 %v3729_v33, %v3725_v4 }
 0xc38   : > { %4029 = vmatprep.mubr.bf16.mxu1 %v3731_v56 }
 0xc39   : > { %4070 = vmatprep.mubr.bf16.mxu0 %v3733_v60  ;;  %4030 = vmatmul.mubr.bf16.vlgmr.msra.gmra.mrb[48].mxu1 %v3730_v3  ;;  %v5262_v3 = vld [vmem:[%s6546_s24 + $0x30] sm:$0xff] (!%p4678_p7)   ;;  %v4679_v60 = vld [vmem:[%s6547_s19] ss:$0 sm:$0xff] (!%p4678_p7) }
 0xc3a   : > { %4071 = vmatmul.mubr.bf16.vlgmr.msra.gmra.mrb[36].mxu0 %v3732_v31 }
 0xc3b   : > { %4936 = vmatpush3.bf16.msra.mxu0 (!%p4678_p7), %v5256_v19  ;;  %4951 = vmatprep.mubr.msk.bf16.mxu0 (!%p4678_p7), %vm5460_vm8, %v5459_v20 }
 0xc3c   : > { %4937 = vmatprep.subr.bf16.mxu0 (!%p4678_p7), %v5459_v20 }
 0xc3f   : > { %4938 = vmatpush3.bf16.msra.mxu0 (!%p4678_p7), %v5257_v29 }
 0xc40   : > { %4939 = vmatprep.subr.bf16.mxu0 (!%p4678_p7), %v5459_v20 }
 0xc43   : > { %4940 = vmatpush3.bf16.msra.mxu0 (!%p4678_p7), %v5258_v21 }
 0xc44   : > { %4941 = vmatprep.subr.bf16.mxu0 (!%p4678_p7), %v5459_v20 }
 0xc47   : > { %4942 = vmatpush3.bf16.msra.mxu0 (!%p4678_p7), %v5259_v23 }
 0xc48   : > { %4943 = vmatprep.subr.bf16.mxu0 (!%p4678_p7), %v5459_v20 }
 0xc4b   : > { %4944 = vmatpush3.bf16.msra.mxu0 (!%p4678_p7), %v5260_v24 }
 0xc4c   : > { %4945 = vmatprep.subr.bf16.mxu0 (!%p4678_p7), %v5459_v20 }
 0xc4f   : > { %4946 = vmatpush3.bf16.msra.mxu0 (!%p4678_p7), %v5261_v26 }
 0xc50   : > { %4947 = vmatprep.subr.bf16.mxu0 (!%p4678_p7), %v5459_v20 }
 0xc53   : > { %4948 = vmatpush3.bf16.msra.mxu0 (!%p4678_p7), %v5262_v3 }
 0xc54   : > { %4949 = vmatprep.subr.bf16.mxu0 (!%p4678_p7), %v5459_v20 }
 0xc57   : > { %4950 = vmatpush3.bf16.msra.mxu0 (!%p4678_p7), %v5263_v61 }
 0xc8d   : > { %v4094_v46 = vpop.permute.xlu0 (!%p4678_p7), %4093 }
 0xc91   : > { %v4101_v30 = vpop.permute.xlu0 (!%p4678_p7), %4100 }
 0xd0c   : > { %v4762_v14 = vpop.f32.mrb[48].mxu1 }
 0xd0d   : > { %v4784_v25 = vpop.f32.mrb[36].mxu0  ;;  %v4763_v27 = vpop.f32.mrb[49].mxu1 }
 0xd0e   : > { %v4764_v34 = vadd.f32 %v4763_v27, %v4762_v14  ;;  %v4785_v2 = vpop.f32.mrb[37].mxu0  ;;  %v4765_v63 = vpop.f32.mrb[50].mxu1 }
 0xd0f   : > { %v4786_v28 = vadd.f32 %v4785_v2, %v4784_v25  ;;  %v4787_v12 = vpop.f32.mrb[38].mxu0  ;;  %v4766_v35 = vpop.f32.mrb[51].mxu1 }
 0xd10   : > { %v4032_v36 = vadd.f32 %v4764_v34, %v4645_v59  ;;  %v4767_v37 = vadd.f32 %v4766_v35, %v4765_v63  ;;  %v4788_v39 = vpop.f32.mrb[39].mxu0 }
 0xd11   : > { %v4789_v40 = vadd.f32 %v4788_v39, %v4787_v12 }
 0xd12   : > { %v4073_v32 = vadd.f32 %v4786_v28, %v4032_v36  ;;  %v4035_v42 = vadd.f32 %v4767_v37, %v4645_v59  ;;  %4086 = sbr.rel (%p4678_p7) target bundleno = 3911 (0xf47), region = 112  ;;  %v4680_v59 = vld [vmem:[%s6548_s14] ss:$0 sm:$0xff] (!%p4678_p7) }
 0xd14   : > { %v4079_v44 = vadd.f32 %v4073_v32, %v6272_v43  ;;  %v4076_v45 = vadd.f32 %v4789_v40, %v4035_v42 }
 0xd16   : > { %4081 = vst [vmem:[#allocation2] sm:$0xff] %v4079_v44  ;;  %v4080_v9 = vadd.f32 %v4076_v45, %v6274_v41  ;;  %v4102_v43 = vmul.f32 (!%p4678_p7), %v4094_v46, %v4079_v44 }
 0xd18   : > { %4082 = vst [vmem:[#allocation2 + $0x8] sm:$0xff] %v4080_v9  ;;  %v4104_v5 = vrot.slane (!%p4678_p7), %v4102_v43, 4  ;;  %v4103_v41 = vmul.f32 (!%p4678_p7), %v4101_v30, %v4080_v9 }
 0xd1a   : > { %v4105_v50 = vadd.f32 %v4104_v5, %v4102_v43  ;;  %v4110_v52 = vrot.slane %v4103_v41, 4 }
 0xd1c   : > { %v4106_v51 = vrot.slane %v4105_v50, 2  ;;  %v4111_v54 = vadd.f32 %v4110_v52, %v4103_v41 }
 0xd1e   : > { %v4107_v53 = vadd.f32 %v4106_v51, %v4105_v50  ;;  %v4112_v55 = vrot.slane %v4111_v54, 2 }
 0xd20   : > { %v4108_v0 = vrot.slane %v4107_v53, 1  ;;  %v4113_v62 = vadd.f32 %v4112_v55, %v4111_v54 }
 0xd22   : > { %v4114_v7 = vrot.slane %v4113_v62, 1  ;;  %v4109_v57 = vadd.f32 %v4108_v0, %v4107_v53 }
 0xd24   : > { %v4115_v8 = vadd.f32 %v4114_v7, %v4113_v62 }
 0xd26   : > { %v4121_v58 = vsel %vm4120_vm6, %v4115_v8, %v4109_v57 }
 0xd27   : > { %v4124_v1 = vsel %vm4123_vm7, %v4121_v58, 0.0 }
 0xd28   : > { %4125 = vadd.xlane.f32.xlu1 %v4124_v1 }
 0xdb5   : > { %v4126_v38 = vpop.xlane.xlu1 %4125 }
 0xdb6   : > { %v4127_v10 = vmul.f32 0.0078125, %v4126_v38 }
 0xdb8   : > { %v4129_v11 = vrot.slane %v4127_v10, 1  ;;  %v4132_v13 = vsub.f32 %v4109_v57, %v4127_v10 }
 0xdba   : > { %v4133_v15 = vsub.f32 %v4115_v8, %v4129_v11  ;;  %v4134_v17 = vmul.f32 %v4132_v13, %v4132_v13 }
 0xdbc   : > { %v4135_v16 = vmul.f32 %v4133_v15, %v4133_v15 }
 0xdbe   : > { %v4138_v22 = vrot.slane %v4135_v16, 7 }
 0xdc0   : > { %v4139_v18 = vsel %vm4120_vm6, %v4138_v22, %v4134_v17 }
 0xdc1   : > { %v4141_v6 = vsel %vm4123_vm7, %v4139_v18, 0.0 }
 0xdc2   : > { %4142 = vadd.xlane.f32.xlu1 %v4141_v6 }
 0xe4f   : > { %v4143_v4 = vpop.xlane.xlu1 %4142 }
 0xe50   : > { %v4144_v31 = vmul.f32 0.0078125, %v4143_v4 }
 0xe52   : > { %v4145_v33 = vadd.f32 1e-05, %v4144_v31 }
 0xe54   : > { %5264 = vrsqrt.f32 %v4145_v33 }
 0xe5e   : > { %v5265_v56 = vpop.eup %5264 }
 0xe5f   : > { %v4148_v14 = vrot.slane %v5265_v56, 1  ;;  %v4151_v25 = vmul.f32 %v5265_v56, %v4132_v13 }
 0xe61   : > { %v4152_v27 = vmul.f32 %v4148_v14, %v4133_v15  ;;  %v4159_v34 = vmul.f32 %v4679_v60, %v4151_v25 }
 0xe63   : > { %v4160_v2 = vmul.f32 %v4679_v60, %v4152_v27  ;;  %v4167_v63 = vadd.f32 %v4680_v59, %v4159_v34 }
 0xe65   : > { %v4168_v28 = vadd.f32 %v4680_v59, %v4160_v2  ;;  %v4169_v12 = vpack.c.bf16 %v4167_v63, %v4167_v63 }
 0xe67   : > { %v4170_v35 = vpack.c.bf16 %v4168_v28, %v4168_v28  ;;  %v4189_v37 = vunpack.c.l.b16 %v4169_v12 }
 0xe69   : > { %v4190_v36 = vunpack.c.l.b16 %v4170_v35 }
 0xe6b   : > { %v4191_v39 = vrot.slane %v4190_v36, 7 }
 0xe6d   : > { %v4192_v40 = vsel %vm4120_vm6, %v4191_v39, %v4189_v37 }
 0xe6e   : > { %v4193_v32 = vpack.c.b16 %v4192_v40, %v4192_v40 }
 0xe70   : > { %4952 = vmatmul.mubr.bf16.vlgmr.msra.gmra.mrb[0].mxu0 %v4193_v32 }
 0xf43   : > { %v4277_v42 = vpop.f32.mrb[0].mxu0 }
 0xf44   : > { %4283 = vst [vmem:[#allocation9] sm:$0x3] %v4277_v42  ;;  %v4953_v44 = vpop.f32.mrb[1].mxu0 }
 0xf45   : > { %v4280_v45 = vpop.f32.mrb[2].mxu0 }
 0xf46   : > { %v4954_v9 = vpop.f32.mrb[3].mxu0 }
 0xf47 PF: > { %p4980_p13 = scmp.eq.s32.totalorder %s5586_s1, 1  ;;  %s5461_s21 = smov [#allocation9]  }
 0xf48   : > { %s4293_s30 = sshll.u32 %s5461_s21, 4  ;;  %s4294_s30 = int_to_ptr.vmem [resolvable:$true] %s4293_s30 }
 0xf49   : > { %s5356_s0 = scalar_lea.vmem %s4294_s30, 32  ;;  %p5363_p8 = scmp.lt.s32.totalorder %s4294_s30, %s4294_s30 }
 0xf4a   : > { %p5357_p3 = scmp.ne.s32.totalorder %s4294_s30, %s5356_s0  ;;  %p5364_p5 = scmp.lt.s32.totalorder %s5356_s0, %s5356_s0 }
 0xf4c   : > { %p5358_p4 = pnand %p5357_p3, %p4980_p13  ;;  %p5365_p2 = por %p5364_p5, %p5363_p8 }
 0xf4e   : > { %p5359_p6 = pneg %p5358_p4 }
 0xf50   : > { %p5366_p12 = pnand %p5365_p2, %p5359_p6 }
 0xf52   : > { %5369 = shalt.err (!%p5366_p12)
}
 0xf53   : > { %s6549_s26 = sld [smem:[#allocation32_spill]] }
 0xf59   : > { %s5370_s23 = scalar_lea.hbm %s6549_s26, 32 }
 0xf5a   : > { %p5371_p0 = scmp.ne.s32.totalorder %s6549_s26, %s5370_s23  ;;  %p5376_p9 = scmp.lt.u32.totalorder %s5370_s23, %s6549_s26 }
 0xf5c   : > { %p5372_p11 = pnand %p5371_p0, %p4980_p13 }
 0xf5e   : > { %p5373_p10 = pneg %p5372_p11 }
 0xf60   : > { %p5378_p1 = pnand %p5376_p9, %p5373_p10 }
 0xf62   : > { %5381 = shalt.err (!%p5378_p1)
}
 0xf63   : > { %4966 = dma.vmem_to_hbm [thread:$0]  (%p4980_p13), %s4294_s30, 32, %s6549_s26, [#allocation5]  }
 0xf64   : > { %5415 = dma.done.wait (%p4980_p13), [#allocation5], 32  }
 0xf65   : > { %5417 = vsyncadd (%p4980_p13), [#allocation5], 4294967264 }
 0xf66 PF: > { %s6550_s29 = sld [smem:[#allocation16_spill]]  ;;  %s6551_s27 = sld [smem:[#allocation13_spill]] }
 0xf67   : > { %s6552_s28 = sld [smem:[#allocation14_spill]]  ;;  %s6554_s30 = sld [smem:[#allocation15_spill]] }
 0xf68   : > { %s6555_s0 = sld [smem:[#allocation17_spill]] }
 0xf6c   : > { %s35_s19 = sadd.s32 1, %s6550_s29   ;;  %s6553_s29 = sld [smem:[#allocation18_spill]] }
 0xf6d   : > { %p32_p7 = scmp.ge.s32.totalorder %s35_s19, 4  }
 0xf6f   :  { %34 = sbr.rel (!%p32_p7) target bundleno = 22 (0x16), region = 195 }
 0xf76   :  { %4306 = vsyncpa [#allocation4], 1 }
 0xf77   :  { %4308 = vsyncpa [#allocation4 + $0x1], 1 }
 0xf78   :  { %4309 = vsyncpa [#allocation7], 1 }
 0xf79   :  { %4311 = vsyncpa [#allocation7 + $0x1], 1 }
 0xf7a   :  { %4312 = vsyncpa [#allocation5], 1 }
 0xf7b   :  { %4314 = vsyncpa [#allocation5 + $0x1], 1 }

</bundles_post_ra>
